<compile_context>
chip_gen: v6e
topology: v6e:2x2x1
jax: 0.10.0
libtpu: 0.0.40
codegen_flags: <defaults>
</compile_context>

<pallas_src>
import functools

import jax
import jax.numpy as jnp
from jax.experimental import pallas as pl
from jax.experimental.pallas import tpu as pltpu

_EPS = 1e-5                       # nn.InstanceNorm3d default eps
K = 3                             # conv kernel size
_INV_SQRT2 = 0.7071067811865476


def _round_up(x, m):
    return ((x + m - 1) // m) * m


def _gelu_exact(x):
    """Exact (erf-based) GELU matching nn.GELU() default.

    erf via Abramowitz & Stegun 7.1.26 (|err| <= 1.5e-7).  The divide is exact:
    the previous approx-reciprocal version dominated the error budget.
    """
    z = jnp.abs(x) * _INV_SQRT2
    t = 1.0 / (1.0 + 0.3275911 * z)
    poly = ((((1.061405429 * t - 1.453152027) * t + 1.421413741) * t
             - 0.284496736) * t + 0.254829592) * t
    erf_z = 1.0 - poly * jnp.exp(-z * z)
    erf_x = jnp.where(x >= 0, erf_z, -erf_z)
    return 0.5 * x * (1.0 + erf_x)


# ---------------------------------------------------------------------------
# Lane-shift helper: pltpu.roll (XLU rotate, an otherwise idle slot) when the
# current execution mode supports it and matches jnp.roll semantics; otherwise
# a slice+concat shift.  Probed once with a tiny standalone pallas_call OUTSIDE
# any kernel trace so the main kernel never stages an unsupported op.
# ---------------------------------------------------------------------------
_ROLL_OK = None


def _lane_roll_available():
    global _ROLL_OK
    if _ROLL_OK is None:
        def probe_kernel(x_ref, o_ref):
            o_ref[...] = pltpu.roll(x_ref[...], 3, axis=1)

        try:
            x = jnp.arange(8 * 128, dtype=jnp.float32).reshape(8, 128)
            out = jax.block_until_ready(
                pl.pallas_call(
                    probe_kernel,
                    out_shape=jax.ShapeDtypeStruct((8, 128), jnp.float32))(x))
            _ROLL_OK = bool(jnp.allclose(out, jnp.roll(x, 3, axis=1)))
        except Exception:
            _ROLL_OK = False      # lowering/interpret unsupported -> fallback
    return _ROLL_OK


def _shift_lanes(x, s, size, use_roll):
    """y[..., l] = x[..., (l + s) % size]; wrapped lanes are masked by caller."""
    k = s % size
    if k == 0:
        return x
    if use_roll:
        return pltpu.roll(x, size - k, axis=x.ndim - 1)       # XLU rotate
    return jnp.concatenate([x[..., k:], x[..., :k]], axis=-1)  # lane realign


def _conv_in_gelu_kernel(x_ref, w_ref, o_ref, rhs_ref, *,
                         D, H, W, cin, cout, use_roll):
    """One grid step = one batch sample.

    x_ref   : (cin,  D*H*W)     channels in sublanes, flattened volume in lanes.
    w_ref   : (cout, 27*cin)    flattened conv weights (tap-major, then cin).
    o_ref   : (cout, D*H*W)     fused Conv + InstanceNorm + GELU output.
    rhs_ref : (27*cin, D*H*W)   VMEM scratch holding the im2col RHS.
    """
    HW = H * W
    DHW = D * HW

    x = x_ref[...]

    # Per-lane coordinates / halo masks, built ONCE and reused for all taps
    # (JAX does not CSE broadcasts, so hoisting here matters).
    lane = jax.lax.broadcasted_iota(jnp.int32, (1, DHW), 1)
    hw_c = lane % HW
    w_c = lane % W
    d_ok = {-1: lane >= HW, 0: None, 1: lane < (DHW - HW)}
    h_ok = {-1: hw_c >= W, 0: None, 1: hw_c < (HW - W)}
    w_ok = {-1: w_c >= 1, 0: None, 1: w_c < (W - 1)}

    # im2col: 27 lane-shifted, masked copies written straight into the RHS
    # scratch (no Python-list concat).  The centre tap needs no mask.
    tap = 0
    for dd in (-1, 0, 1):
        for dh in (-1, 0, 1):
            for dw in (-1, 0, 1):
                s = dd * HW + dh * W + dw
                val = _shift_lanes(x, s, DHW, use_roll)
                mask = None
                for m in (d_ok[dd], h_ok[dh], w_ok[dw]):
                    if m is not None:
                        mask = m if mask is None else (mask & m)
                if mask is not None:
                    val = jnp.where(mask, val, 0.0)
                rhs_ref[tap * cin:(tap + 1) * cin, :] = val
                tap += 1

    # Single 2-D MXU matmul, contraction depth 27*cin; the weight stays 2-D
    # (no per-depth broadcast), f32 operands with an f32 accumulator.
    # TODO(synk): cast operands to bf16 (keep the f32 accumulator) for full-rate
    # MXU and half the RHS VMEM once a looser numerical parity bound is OK.
    acc = jnp.dot(w_ref[...], rhs_ref[...],
                  preferred_element_type=jnp.float32)          # (cout, DHW)
    # Conv bias intentionally omitted: InstanceNorm(affine=False) removes any
    # per-channel constant exactly.

    # InstanceNorm3d (biased variance, eps=1e-5).  Two-pass centred form for
    # numerical safety; `cent` is reused for both the variance and the output.
    mean = jnp.sum(acc, axis=1, keepdims=True) * (1.0 / DHW)
    cent = acc - mean
    var = jnp.sum(cent * cent, axis=1, keepdims=True) * (1.0 / DHW)

    # Exact GELU epilogue, lane-dense store.
    o_ref[...] = _gelu_exact(cent * jax.lax.rsqrt(var + _EPS))


def conv3d_in_gelu(x, w_flat, *, D, H, W):
    """Fused Conv3d(k=3, pad=1) + InstanceNorm3d + GELU.

    x      : (N, Cin_p, D*H*W)  channel-padded, channels-in-sublanes layout.
    w_flat : (Cout_p, 27*Cin_p)
    returns: (N, Cout_p, D*H*W)
    """
    N, cin_p, DHW = x.shape
    assert DHW == D * H * W
    cout_p = w_flat.shape[0]
    use_roll = _lane_roll_available()      # probed outside kernel tracing
    kernel = functools.partial(_conv_in_gelu_kernel, D=D, H=H, W=W,
                               cin=cin_p, cout=cout_p, use_roll=use_roll)

    # Scoped-VMEM ceiling derived from the resident blocks (double-buffered
    # in/out + weight + im2col scratch), clamped to 48 MiB so it stays legal on
    # every generation (v7x: 64 MiB physical, 32 MiB default scoped).
    block_bytes = 4 * (2 * cin_p * DHW + 2 * cout_p * DHW
                       + 2 * cout_p * K * K * K * cin_p
                       + K * K * K * cin_p * DHW)
    vmem_limit = int(min(max(2 * block_bytes, 32 * 1024 * 1024),
                         48 * 1024 * 1024))

    # TODO(synk): for realistic UNet volumes, add a D-tile grid axis (1-plane
    # halo, "arbitrary") with a (sum, sumsq) scratch for the InstanceNorm and a
    # cheap normalize+GELU second pass, and expose (N x D-tiles) as the
    # parallel axis so v7x's second TensorCore always has work; whole-sample
    # per step is fine at these sizes.
    # TODO(synk): on v5e/v6e (128 MiB VMEM) fuse both conv stages into one
    # pallas_call (stage-1 activation kept in VMEM) to skip the inter-stage HBM
    # round trip.
    return pl.pallas_call(
        kernel,
        out_shape=jax.ShapeDtypeStruct((N, cout_p, DHW), jnp.float32),
        grid_spec=pltpu.PrefetchScalarGridSpec(
            num_scalar_prefetch=0,
            grid=(N,),
            in_specs=[
                pl.BlockSpec((None, cin_p, DHW), lambda n: (n, 0, 0)),
                pl.BlockSpec((cout_p, w_flat.shape[1]), lambda n: (0, 0)),
            ],
            out_specs=pl.BlockSpec((None, cout_p, DHW), lambda n: (n, 0, 0)),
            scratch_shapes=[pltpu.VMEM((K * K * K * cin_p, DHW), jnp.float32)],
        ),
        compiler_params=pltpu.CompilerParams(
            dimension_semantics=("parallel",),   # batch samples are independent
            vmem_limit_bytes=vmem_limit),
    )(x, w_flat)


def _flatten_weight(w, cin_p, cout_p):
    """(3,3,3,cin,cout) -> (cout_p, 27*cin_p); channels zero-padded to x8."""
    _, _, _, cin, cout = w.shape
    w = jnp.pad(w, ((0, 0), (0, 0), (0, 0), (0, cin_p - cin), (0, cout_p - cout)))
    return jnp.transpose(w.reshape(K * K * K * cin_p, cout_p), (1, 0))


class DoubleConvPallas:
    """JAX/Pallas equivalent of the PyTorch DoubleConv module."""

    def __init__(self, in_channels, out_channels, key):
        ks = jax.random.split(key, 4)

        def init(kw, kb, cin, cout):
            # PyTorch Conv3d default init: U(-b, b), b = 1/sqrt(fan_in = cin*27).
            bound = 1.0 / (cin * K * K * K) ** 0.5
            w = jax.random.uniform(kw, (K, K, K, cin, cout), jnp.float32,
                                   -bound, bound)
            b = jax.random.uniform(kb, (cout,), jnp.float32, -bound, bound)
            return w, b

        self.in_channels, self.out_channels = in_channels, out_channels
        self.w1, self.b1 = init(ks[0], ks[1], in_channels, out_channels)
        self.w2, self.b2 = init(ks[2], ks[3], out_channels, out_channels)

        # Channels padded to the f32 sublane tile (8): padded channels stay
        # exactly zero through conv/IN/GELU, so the two stages chain with no
        # XLA pad/transpose in between.  b1/b2 kept only for API parity: a
        # pre-InstanceNorm per-channel bias has no effect on the output.
        self.cin_p = _round_up(in_channels, 8)
        self.cmid_p = _round_up(out_channels, 8)
        self.wf1 = _flatten_weight(self.w1, self.cin_p, self.cmid_p)
        self.wf2 = _flatten_weight(self.w2, self.cmid_p, self.cmid_p)

    def __call__(self, x_ncdhw):
        N, C, D, H, W = x_ncdhw.shape
        # NCDHW -> (N, C_pad, D*H*W): a reshape + channel pad, no transpose.
        x = x_ncdhw.reshape(N, C, D * H * W)
        if self.cin_p != C:
            x = jnp.pad(x, ((0, 0), (0, self.cin_p - C), (0, 0)))
        y = conv3d_in_gelu(x, self.wf1, D=D, H=H, W=W)
        y = conv3d_in_gelu(y, self.wf2, D=D, H=H, W=W)   # same layout, chains free
        return y[:, :self.out_channels, :].reshape(N, self.out_channels, D, H, W)


def _ref_double_conv(x_ncdhw, w1, b1, w2, b2):
    """Pure-JAX reference (PyTorch semantics) at full f32 precision."""

    def conv(x, w, b):
        w_oidhw = jnp.transpose(w, (4, 3, 0, 1, 2))
        y = jax.lax.conv_general_dilated(
            x, w_oidhw, window_strides=(1, 1, 1),
            padding=((1, 1), (1, 1), (1, 1)),
            dimension_numbers=("NCDHW", "OIDHW", "NCDHW"),
            precision=jax.lax.Precision.HIGHEST)
        return y + b.reshape(1, -1, 1, 1, 1)

    def inorm(x):
        m = jnp.mean(x, axis=(2, 3, 4), keepdims=True)
        v = jnp.mean((x - m) ** 2, axis=(2, 3, 4), keepdims=True)
        return (x - m) * jax.lax.rsqrt(v + _EPS)

    y = jax.nn.gelu(inorm(conv(x_ncdhw, w1, b1)), approximate=False)
    y = jax.nn.gelu(inorm(conv(y, w2, b2)), approximate=False)
    return y


if __name__ == "__main__":
    key = jax.random.PRNGKey(0)
    k_param, k_x = jax.random.split(key)

    N, Cin, Cout, D, H, W = 2, 4, 8, 8, 8, 8   # D*H*W = 512 -> lane-dense stores
    model = DoubleConvPallas(Cin, Cout, k_param)
    x = jax.random.normal(k_x, (N, Cin, D, H, W), jnp.float32)

    out = jax.block_until_ready(model(x))

    assert out.shape == (N, Cout, D, H, W)
    assert bool(jnp.all(jnp.isfinite(out)))

    ref = _ref_double_conv(x, model.w1, model.b1, model.w2, model.b2)
    max_err = float(jnp.max(jnp.abs(out - ref)))
    assert max_err < 5e-3, f"max abs error vs reference: {max_err}"

    print("KERNEL_OK")
</pallas_src>

<mosaic_0001>
module attributes {stable_mosaic.version = 11 : i64} {
  func.func @probe_kernel(%arg0: memref<8x128xf32, #tpu.memory_space<vmem>>, %arg1: memref<8x128xf32, #tpu.memory_space<vmem>>) attributes {dimension_semantics = [], scalar_prefetch = 0 : i64, scratch_operands = 0 : i64, tpu.core_type = #tpu.core_type<tc>} {
    %c0 = arith.constant 0 : index
    %c0_0 = arith.constant 0 : index
    %0 = vector.load %arg0[%c0, %c0_0] : memref<8x128xf32, #tpu.memory_space<vmem>>, vector<8x128xf32>
    %c3_i32 = arith.constant 3 : i32
    %1 = tpu.dynamic_rotate %0 by %c3_i32 dim 1 : vector<8x128xf32>, i32 -> vector<8x128xf32>
    %c0_1 = arith.constant 0 : index
    %c0_2 = arith.constant 0 : index
    %2 = vector.load %arg1[%c0_1, %c0_2] : memref<8x128xf32, #tpu.memory_space<vmem>>, vector<8x128xf32>
    tpu.vector_store %arg1[%c0_1, %c0_2], %1 {strides = array<i32>} : memref<8x128xf32, #tpu.memory_space<vmem>>, vector<8x128xf32>,
    return
  }
}

module attributes {stable_mosaic.version = 11 : i64} {
  func.func @_conv_in_gelu_kernel(%arg0: i32, %arg1: memref<1x8x512xf32, #tpu.memory_space<vmem>>, %arg2: memref<8x216xf32, #tpu.memory_space<vmem>>, %arg3: memref<1x8x512xf32, #tpu.memory_space<vmem>>, %arg4: memref<216x512xf32, #tpu.memory_space<vmem>>) attributes {dimension_semantics = [#tpu.dimension_semantics<parallel>], iteration_bounds = array<i64: 2>, scalar_prefetch = 0 : i64, scratch_operands = 1 : i64, tpu.core_type = #tpu.core_type<tc>, window_params = [{transform_indices = @transform_0, window_bounds = array<i64: 1, 8, 512>}, {pipeline_mode = #tpu.pipeline_mode<synchronous>, transform_indices = @transform_1, window_bounds = array<i64: 8, 216>}, {transform_indices = @transform_2, window_bounds = array<i64: 1, 8, 512>}]} {
    %c0 = arith.constant 0 : index
    %c0_0 = arith.constant 0 : index
    %c0_1 = arith.constant 0 : index
    %0 = vector.load %arg1[%c0, %c0_0, %c0_1] : memref<1x8x512xf32, #tpu.memory_space<vmem>>, vector<1x8x512xf32>
    %1 = vector.shape_cast %0 : vector<1x8x512xf32> to vector<8x512xf32>
    %2 = tpu.iota {dimensions = array<i32: 1>} : vector<1x512xi32>
    %c64_i32 = arith.constant 64 : i32
    %c0_i32 = arith.constant 0 : i32
    %3 = arith.cmpi eq, %c64_i32, %c0_i32 : i32
    %c1_i32 = arith.constant 1 : i32
    %4 = arith.select %3, %c1_i32, %c64_i32 : i32
    %5 = vector.broadcast %4 : i32 to vector<1x512xi32>
    %6 = arith.remsi %2, %5 : vector<1x512xi32>
    %c0_i32_2 = arith.constant 0 : i32
    %7 = vector.broadcast %c0_i32_2 : i32 to vector<1x512xi32>
    %8 = arith.cmpi ne, %6, %7 : vector<1x512xi32>
    %c0_i32_3 = arith.constant 0 : i32
    %9 = vector.broadcast %c0_i32_3 : i32 to vector<1x512xi32>
    %10 = arith.cmpi slt, %6, %9 : vector<1x512xi32>
    %c0_i32_4 = arith.constant 0 : i32
    %11 = arith.cmpi slt, %4, %c0_i32_4 : i32
    %12 = vector.broadcast %11 : i1 to vector<1x512xi1>
    %13 = vector.broadcast %12 : vector<1x512xi1> to vector<1x512xi1>
    %14 = arith.xori %10, %13 : vector<1x512xi1>
    %15 = arith.andi %14, %8 : vector<1x512xi1>
    %16 = vector.broadcast %4 : i32 to vector<1x512xi32>
    %17 = arith.addi %6, %16 : vector<1x512xi32>
    %18 = arith.select %15, %17, %6 : vector<1x512xi1>, vector<1x512xi32>
    %c8_i32 = arith.constant 8 : i32
    %c0_i32_5 = arith.constant 0 : i32
    %19 = arith.cmpi eq, %c8_i32, %c0_i32_5 : i32
    %c1_i32_6 = arith.constant 1 : i32
    %20 = arith.select %19, %c1_i32_6, %c8_i32 : i32
    %21 = vector.broadcast %20 : i32 to vector<1x512xi32>
    %22 = arith.remsi %2, %21 : vector<1x512xi32>
    %c0_i32_7 = arith.constant 0 : i32
    %23 = vector.broadcast %c0_i32_7 : i32 to vector<1x512xi32>
    %24 = arith.cmpi ne, %22, %23 : vector<1x512xi32>
    %c0_i32_8 = arith.constant 0 : i32
    %25 = vector.broadcast %c0_i32_8 : i32 to vector<1x512xi32>
    %26 = arith.cmpi slt, %22, %25 : vector<1x512xi32>
    %c0_i32_9 = arith.constant 0 : i32
    %27 = arith.cmpi slt, %20, %c0_i32_9 : i32
    %28 = vector.broadcast %27 : i1 to vector<1x512xi1>
    %29 = vector.broadcast %28 : vector<1x512xi1> to vector<1x512xi1>
    %30 = arith.xori %26, %29 : vector<1x512xi1>
    %31 = arith.andi %30, %24 : vector<1x512xi1>
    %32 = vector.broadcast %20 : i32 to vector<1x512xi32>
    %33 = arith.addi %22, %32 : vector<1x512xi32>
    %34 = arith.select %31, %33, %22 : vector<1x512xi1>, vector<1x512xi32>
    %c64_i32_10 = arith.constant 64 : i32
    %35 = vector.broadcast %c64_i32_10 : i32 to vector<1x512xi32>
    %36 = arith.cmpi sge, %2, %35 : vector<1x512xi32>
    %c448_i32 = arith.constant 448 : i32
    %37 = vector.broadcast %c448_i32 : i32 to vector<1x512xi32>
    %38 = arith.cmpi slt, %2, %37 : vector<1x512xi32>
    %c8_i32_11 = arith.constant 8 : i32
    %39 = vector.broadcast %c8_i32_11 : i32 to vector<1x512xi32>
    %40 = arith.cmpi sge, %18, %39 : vector<1x512xi32>
    %c56_i32 = arith.constant 56 : i32
    %41 = vector.broadcast %c56_i32 : i32 to vector<1x512xi32>
    %42 = arith.cmpi slt, %18, %41 : vector<1x512xi32>
    %c1_i32_12 = arith.constant 1 : i32
    %43 = vector.broadcast %c1_i32_12 : i32 to vector<1x512xi32>
    %44 = arith.cmpi sge, %34, %43 : vector<1x512xi32>
    %c7_i32 = arith.constant 7 : i32
    %45 = vector.broadcast %c7_i32 : i32 to vector<1x512xi32>
    %46 = arith.cmpi slt, %34, %45 : vector<1x512xi32>
    %47 = vector.extract_strided_slice %1 {offsets = [0, 439], sizes = [8, 73], strides = [1, 1]} : vector<8x512xf32> to vector<8x73xf32>
    %48 = vector.extract_strided_slice %1 {offsets = [0, 0], sizes = [8, 439], strides = [1, 1]} : vector<8x512xf32> to vector<8x439xf32>
    %49 = tpu.concatenate %47, %48 in 1 : vector<8x73xf32>, vector<8x439xf32> -> vector<8x512xf32>
    %50 = arith.andi %36, %40 : vector<1x512xi1>
    %51 = arith.andi %50, %44 : vector<1x512xi1>
    %cst = arith.constant 0.000000e+00 : f32
    %52 = vector.shape_cast %51 : vector<1x512xi1> to vector<1x512xi1>
    %53 = vector.broadcast %52 : vector<1x512xi1> to vector<8x512xi1>
    %54 = vector.broadcast %cst : f32 to vector<8x512xf32>
    %55 = arith.select %53, %49, %54 : vector<8x512xi1>, vector<8x512xf32>
    %c0_13 = arith.constant 0 : index
    %c0_14 = arith.constant 0 : index
    %56 = vector.load %arg4[%c0_13, %c0_14] : memref<216x512xf32, #tpu.memory_space<vmem>>, vector<8x512xf32>
    tpu.vector_store %arg4[%c0_13, %c0_14], %55 {strides = array<i32>} : memref<216x512xf32, #tpu.memory_space<vmem>>, vector<8x512xf32>,
    %57 = vector.extract_strided_slice %1 {offsets = [0, 440], sizes = [8, 72], strides = [1, 1]} : vector<8x512xf32> to vector<8x72xf32>
    %58 = vector.extract_strided_slice %1 {offsets = [0, 0], sizes = [8, 440], strides = [1, 1]} : vector<8x512xf32> to vector<8x440xf32>
    %59 = tpu.concatenate %57, %58 in 1 : vector<8x72xf32>, vector<8x440xf32> -> vector<8x512xf32>
    %60 = arith.andi %36, %40 : vector<1x512xi1>
    %cst_15 = arith.constant 0.000000e+00 : f32
    %61 = vector.shape_cast %60 : vector<1x512xi1> to vector<1x512xi1>
    %62 = vector.broadcast %61 : vector<1x512xi1> to vector<8x512xi1>
    %63 = vector.broadcast %cst_15 : f32 to vector<8x512xf32>
    %64 = arith.select %62, %59, %63 : vector<8x512xi1>, vector<8x512xf32>
    %c8 = arith.constant 8 : index
    %c0_16 = arith.constant 0 : index
    %65 = vector.load %arg4[%c8, %c0_16] : memref<216x512xf32, #tpu.memory_space<vmem>>, vector<8x512xf32>
    tpu.vector_store %arg4[%c8, %c0_16], %64 {strides = array<i32>} : memref<216x512xf32, #tpu.memory_space<vmem>>, vector<8x512xf32>,
    %66 = vector.extract_strided_slice %1 {offsets = [0, 441], sizes = [8, 71], strides = [1, 1]} : vector<8x512xf32> to vector<8x71xf32>
    %67 = vector.extract_strided_slice %1 {offsets = [0, 0], sizes = [8, 441], strides = [1, 1]} : vector<8x512xf32> to vector<8x441xf32>
    %68 = tpu.concatenate %66, %67 in 1 : vector<8x71xf32>, vector<8x441xf32> -> vector<8x512xf32>
    %69 = arith.andi %36, %40 : vector<1x512xi1>
    %70 = arith.andi %69, %46 : vector<1x512xi1>
    %cst_17 = arith.constant 0.000000e+00 : f32
    %71 = vector.shape_cast %70 : vector<1x512xi1> to vector<1x512xi1>
    %72 = vector.broadcast %71 : vector<1x512xi1> to vector<8x512xi1>
    %73 = vector.broadcast %cst_17 : f32 to vector<8x512xf32>
    %74 = arith.select %72, %68, %73 : vector<8x512xi1>, vector<8x512xf32>
    %c16 = arith.constant 16 : index
    %c0_18 = arith.constant 0 : index
    %75 = vector.load %arg4[%c16, %c0_18] : memref<216x512xf32, #tpu.memory_space<vmem>>, vector<8x512xf32>
    tpu.vector_store %arg4[%c16, %c0_18], %74 {strides = array<i32>} : memref<216x512xf32, #tpu.memory_space<vmem>>, vector<8x512xf32>,
    %76 = vector.extract_strided_slice %1 {offsets = [0, 447], sizes = [8, 65], strides = [1, 1]} : vector<8x512xf32> to vector<8x65xf32>
    %77 = vector.extract_strided_slice %1 {offsets = [0, 0], sizes = [8, 447], strides = [1, 1]} : vector<8x512xf32> to vector<8x447xf32>
    %78 = tpu.concatenate %76, %77 in 1 : vector<8x65xf32>, vector<8x447xf32> -> vector<8x512xf32>
    %79 = arith.andi %36, %44 : vector<1x512xi1>
    %cst_19 = arith.constant 0.000000e+00 : f32
    %80 = vector.shape_cast %79 : vector<1x512xi1> to vector<1x512xi1>
    %81 = vector.broadcast %80 : vector<1x512xi1> to vector<8x512xi1>
    %82 = vector.broadcast %cst_19 : f32 to vector<8x512xf32>
    %83 = arith.select %81, %78, %82 : vector<8x512xi1>, vector<8x512xf32>
    %c24 = arith.constant 24 : index
    %c0_20 = arith.constant 0 : index
    %84 = vector.load %arg4[%c24, %c0_20] : memref<216x512xf32, #tpu.memory_space<vmem>>, vector<8x512xf32>
    tpu.vector_store %arg4[%c24, %c0_20], %83 {strides = array<i32>} : memref<216x512xf32, #tpu.memory_space<vmem>>, vector<8x512xf32>,
    %85 = vector.extract_strided_slice %1 {offsets = [0, 448], sizes = [8, 64], strides = [1, 1]} : vector<8x512xf32> to vector<8x64xf32>
    %86 = vector.extract_strided_slice %1 {offsets = [0, 0], sizes = [8, 448], strides = [1, 1]} : vector<8x512xf32> to vector<8x448xf32>
    %87 = tpu.concatenate %85, %86 in 1 : vector<8x64xf32>, vector<8x448xf32> -> vector<8x512xf32>
    %cst_21 = arith.constant 0.000000e+00 : f32
    %88 = vector.shape_cast %36 : vector<1x512xi1> to vector<1x512xi1>
    %89 = vector.broadcast %88 : vector<1x512xi1> to vector<8x512xi1>
    %90 = vector.broadcast %cst_21 : f32 to vector<8x512xf32>
    %91 = arith.select %89, %87, %90 : vector<8x512xi1>, vector<8x512xf32>
    %c32 = arith.constant 32 : index
    %c0_22 = arith.constant 0 : index
    %92 = vector.load %arg4[%c32, %c0_22] : memref<216x512xf32, #tpu.memory_space<vmem>>, vector<8x512xf32>
    tpu.vector_store %arg4[%c32, %c0_22], %91 {strides = array<i32>} : memref<216x512xf32, #tpu.memory_space<vmem>>, vector<8x512xf32>,
    %93 = vector.extract_strided_slice %1 {offsets = [0, 449], sizes = [8, 63], strides = [1, 1]} : vector<8x512xf32> to vector<8x63xf32>
    %94 = vector.extract_strided_slice %1 {offsets = [0, 0], sizes = [8, 449], strides = [1, 1]} : vector<8x512xf32> to vector<8x449xf32>
    %95 = tpu.concatenate %93, %94 in 1 : vector<8x63xf32>, vector<8x449xf32> -> vector<8x512xf32>
    %96 = arith.andi %36, %46 : vector<1x512xi1>
    %cst_23 = arith.constant 0.000000e+00 : f32
    %97 = vector.shape_cast %96 : vector<1x512xi1> to vector<1x512xi1>
    %98 = vector.broadcast %97 : vector<1x512xi1> to vector<8x512xi1>
    %99 = vector.broadcast %cst_23 : f32 to vector<8x512xf32>
    %100 = arith.select %98, %95, %99 : vector<8x512xi1>, vector<8x512xf32>
    %c40 = arith.constant 40 : index
    %c0_24 = arith.constant 0 : index
    %101 = vector.load %arg4[%c40, %c0_24] : memref<216x512xf32, #tpu.memory_space<vmem>>, vector<8x512xf32>
    tpu.vector_store %arg4[%c40, %c0_24], %100 {strides = array<i32>} : memref<216x512xf32, #tpu.memory_space<vmem>>, vector<8x512xf32>,
    %102 = vector.extract_strided_slice %1 {offsets = [0, 455], sizes = [8, 57], strides = [1, 1]} : vector<8x512xf32> to vector<8x57xf32>
    %103 = vector.extract_strided_slice %1 {offsets = [0, 0], sizes = [8, 455], strides = [1, 1]} : vector<8x512xf32> to vector<8x455xf32>
    %104 = tpu.concatenate %102, %103 in 1 : vector<8x57xf32>, vector<8x455xf32> -> vector<8x512xf32>
    %105 = arith.andi %36, %42 : vector<1x512xi1>
    %106 = arith.andi %105, %44 : vector<1x512xi1>
    %cst_25 = arith.constant 0.000000e+00 : f32
    %107 = vector.shape_cast %106 : vector<1x512xi1> to vector<1x512xi1>
    %108 = vector.broadcast %107 : vector<1x512xi1> to vector<8x512xi1>
    %109 = vector.broadcast %cst_25 : f32 to vector<8x512xf32>
    %110 = arith.select %108, %104, %109 : vector<8x512xi1>, vector<8x512xf32>
    %c48 = arith.constant 48 : index
    %c0_26 = arith.constant 0 : index
    %111 = vector.load %arg4[%c48, %c0_26] : memref<216x512xf32, #tpu.memory_space<vmem>>, vector<8x512xf32>
    tpu.vector_store %arg4[%c48, %c0_26], %110 {strides = array<i32>} : memref<216x512xf32, #tpu.memory_space<vmem>>, vector<8x512xf32>,
    %112 = vector.extract_strided_slice %1 {offsets = [0, 456], sizes = [8, 56], strides = [1, 1]} : vector<8x512xf32> to vector<8x56xf32>
    %113 = vector.extract_strided_slice %1 {offsets = [0, 0], sizes = [8, 456], strides = [1, 1]} : vector<8x512xf32> to vector<8x456xf32>
    %114 = tpu.concatenate %112, %113 in 1 : vector<8x56xf32>, vector<8x456xf32> -> vector<8x512xf32>
    %115 = arith.andi %36, %42 : vector<1x512xi1>
    %cst_27 = arith.constant 0.000000e+00 : f32
    %116 = vector.shape_cast %115 : vector<1x512xi1> to vector<1x512xi1>
    %117 = vector.broadcast %116 : vector<1x512xi1> to vector<8x512xi1>
    %118 = vector.broadcast %cst_27 : f32 to vector<8x512xf32>
    %119 = arith.select %117, %114, %118 : vector<8x512xi1>, vector<8x512xf32>
    %c56 = arith.constant 56 : index
    %c0_28 = arith.constant 0 : index
    %120 = vector.load %arg4[%c56, %c0_28] : memref<216x512xf32, #tpu.memory_space<vmem>>, vector<8x512xf32>
    tpu.vector_store %arg4[%c56, %c0_28], %119 {strides = array<i32>} : memref<216x512xf32, #tpu.memory_space<vmem>>, vector<8x512xf32>,
    %121 = vector.extract_strided_slice %1 {offsets = [0, 457], sizes = [8, 55], strides = [1, 1]} : vector<8x512xf32> to vector<8x55xf32>
    %122 = vector.extract_strided_slice %1 {offsets = [0, 0], sizes = [8, 457], strides = [1, 1]} : vector<8x512xf32> to vector<8x457xf32>
    %123 = tpu.concatenate %121, %122 in 1 : vector<8x55xf32>, vector<8x457xf32> -> vector<8x512xf32>
    %124 = arith.andi %36, %42 : vector<1x512xi1>
    %125 = arith.andi %124, %46 : vector<1x512xi1>
    %cst_29 = arith.constant 0.000000e+00 : f32
    %126 = vector.shape_cast %125 : vector<1x512xi1> to vector<1x512xi1>
    %127 = vector.broadcast %126 : vector<1x512xi1> to vector<8x512xi1>
    %128 = vector.broadcast %cst_29 : f32 to vector<8x512xf32>
    %129 = arith.select %127, %123, %128 : vector<8x512xi1>, vector<8x512xf32>
    %c64 = arith.constant 64 : index
    %c0_30 = arith.constant 0 : index
    %130 = vector.load %arg4[%c64, %c0_30] : memref<216x512xf32, #tpu.memory_space<vmem>>, vector<8x512xf32>
    tpu.vector_store %arg4[%c64, %c0_30], %129 {strides = array<i32>} : memref<216x512xf32, #tpu.memory_space<vmem>>, vector<8x512xf32>,
    %131 = vector.extract_strided_slice %1 {offsets = [0, 503], sizes = [8, 9], strides = [1, 1]} : vector<8x512xf32> to vector<8x9xf32>
    %132 = vector.extract_strided_slice %1 {offsets = [0, 0], sizes = [8, 503], strides = [1, 1]} : vector<8x512xf32> to vector<8x503xf32>
    %133 = tpu.concatenate %131, %132 in 1 : vector<8x9xf32>, vector<8x503xf32> -> vector<8x512xf32>
    %134 = arith.andi %40, %44 : vector<1x512xi1>
    %cst_31 = arith.constant 0.000000e+00 : f32
    %135 = vector.shape_cast %134 : vector<1x512xi1> to vector<1x512xi1>
    %136 = vector.broadcast %135 : vector<1x512xi1> to vector<8x512xi1>
    %137 = vector.broadcast %cst_31 : f32 to vector<8x512xf32>
    %138 = arith.select %136, %133, %137 : vector<8x512xi1>, vector<8x512xf32>
    %c72 = arith.constant 72 : index
    %c0_32 = arith.constant 0 : index
    %139 = vector.load %arg4[%c72, %c0_32] : memref<216x512xf32, #tpu.memory_space<vmem>>, vector<8x512xf32>
    tpu.vector_store %arg4[%c72, %c0_32], %138 {strides = array<i32>} : memref<216x512xf32, #tpu.memory_space<vmem>>, vector<8x512xf32>,
    %140 = vector.extract_strided_slice %1 {offsets = [0, 504], sizes = [8, 8], strides = [1, 1]} : vector<8x512xf32> to vector<8x8xf32>
    %141 = vector.extract_strided_slice %1 {offsets = [0, 0], sizes = [8, 504], strides = [1, 1]} : vector<8x512xf32> to vector<8x504xf32>
    %142 = tpu.concatenate %140, %141 in 1 : vector<8x8xf32>, vector<8x504xf32> -> vector<8x512xf32>
    %cst_33 = arith.constant 0.000000e+00 : f32
    %143 = vector.shape_cast %40 : vector<1x512xi1> to vector<1x512xi1>
    %144 = vector.broadcast %143 : vector<1x512xi1> to vector<8x512xi1>
    %145 = vector.broadcast %cst_33 : f32 to vector<8x512xf32>
    %146 = arith.select %144, %142, %145 : vector<8x512xi1>, vector<8x512xf32>
    %c80 = arith.constant 80 : index
    %c0_34 = arith.constant 0 : index
    %147 = vector.load %arg4[%c80, %c0_34] : memref<216x512xf32, #tpu.memory_space<vmem>>, vector<8x512xf32>
    tpu.vector_store %arg4[%c80, %c0_34], %146 {strides = array<i32>} : memref<216x512xf32, #tpu.memory_space<vmem>>, vector<8x512xf32>,
    %148 = vector.extract_strided_slice %1 {offsets = [0, 505], sizes = [8, 7], strides = [1, 1]} : vector<8x512xf32> to vector<8x7xf32>
    %149 = vector.extract_strided_slice %1 {offsets = [0, 0], sizes = [8, 505], strides = [1, 1]} : vector<8x512xf32> to vector<8x505xf32>
    %150 = tpu.concatenate %148, %149 in 1 : vector<8x7xf32>, vector<8x505xf32> -> vector<8x512xf32>
    %151 = arith.andi %40, %46 : vector<1x512xi1>
    %cst_35 = arith.constant 0.000000e+00 : f32
    %152 = vector.shape_cast %151 : vector<1x512xi1> to vector<1x512xi1>
    %153 = vector.broadcast %152 : vector<1x512xi1> to vector<8x512xi1>
    %154 = vector.broadcast %cst_35 : f32 to vector<8x512xf32>
    %155 = arith.select %153, %150, %154 : vector<8x512xi1>, vector<8x512xf32>
    %c88 = arith.constant 88 : index
    %c0_36 = arith.constant 0 : index
    %156 = vector.load %arg4[%c88, %c0_36] : memref<216x512xf32, #tpu.memory_space<vmem>>, vector<8x512xf32>
    tpu.vector_store %arg4[%c88, %c0_36], %155 {strides = array<i32>} : memref<216x512xf32, #tpu.memory_space<vmem>>, vector<8x512xf32>,
    %157 = vector.extract_strided_slice %1 {offsets = [0, 511], sizes = [8, 1], strides = [1, 1]} : vector<8x512xf32> to vector<8x1xf32>
    %158 = vector.extract_strided_slice %1 {offsets = [0, 0], sizes = [8, 511], strides = [1, 1]} : vector<8x512xf32> to vector<8x511xf32>
    %159 = tpu.concatenate %157, %158 in 1 : vector<8x1xf32>, vector<8x511xf32> -> vector<8x512xf32>
    %cst_37 = arith.constant 0.000000e+00 : f32
    %160 = vector.shape_cast %44 : vector<1x512xi1> to vector<1x512xi1>
    %161 = vector.broadcast %160 : vector<1x512xi1> to vector<8x512xi1>
    %162 = vector.broadcast %cst_37 : f32 to vector<8x512xf32>
    %163 = arith.select %161, %159, %162 : vector<8x512xi1>, vector<8x512xf32>
    %c96 = arith.constant 96 : index
    %c0_38 = arith.constant 0 : index
    %164 = vector.load %arg4[%c96, %c0_38] : memref<216x512xf32, #tpu.memory_space<vmem>>, vector<8x512xf32>
    tpu.vector_store %arg4[%c96, %c0_38], %163 {strides = array<i32>} : memref<216x512xf32, #tpu.memory_space<vmem>>, vector<8x512xf32>,
    %c104 = arith.constant 104 : index
    %c0_39 = arith.constant 0 : index
    %165 = vector.load %arg4[%c104, %c0_39] : memref<216x512xf32, #tpu.memory_space<vmem>>, vector<8x512xf32>
    tpu.vector_store %arg4[%c104, %c0_39], %1 {strides = array<i32>} : memref<216x512xf32, #tpu.memory_space<vmem>>, vector<8x512xf32>,
    %166 = vector.extract_strided_slice %1 {offsets = [0, 1], sizes = [8, 511], strides = [1, 1]} : vector<8x512xf32> to vector<8x511xf32>
    %167 = vector.extract_strided_slice %1 {offsets = [0, 0], sizes = [8, 1], strides = [1, 1]} : vector<8x512xf32> to vector<8x1xf32>
    %168 = tpu.concatenate %166, %167 in 1 : vector<8x511xf32>, vector<8x1xf32> -> vector<8x512xf32>
    %cst_40 = arith.constant 0.000000e+00 : f32
    %169 = vector.shape_cast %46 : vector<1x512xi1> to vector<1x512xi1>
    %170 = vector.broadcast %169 : vector<1x512xi1> to vector<8x512xi1>
    %171 = vector.broadcast %cst_40 : f32 to vector<8x512xf32>
    %172 = arith.select %170, %168, %171 : vector<8x512xi1>, vector<8x512xf32>
    %c112 = arith.constant 112 : index
    %c0_41 = arith.constant 0 : index
    %173 = vector.load %arg4[%c112, %c0_41] : memref<216x512xf32, #tpu.memory_space<vmem>>, vector<8x512xf32>
    tpu.vector_store %arg4[%c112, %c0_41], %172 {strides = array<i32>} : memref<216x512xf32, #tpu.memory_space<vmem>>, vector<8x512xf32>,
    %174 = vector.extract_strided_slice %1 {offsets = [0, 7], sizes = [8, 505], strides = [1, 1]} : vector<8x512xf32> to vector<8x505xf32>
    %175 = vector.extract_strided_slice %1 {offsets = [0, 0], sizes = [8, 7], strides = [1, 1]} : vector<8x512xf32> to vector<8x7xf32>
    %176 = tpu.concatenate %174, %175 in 1 : vector<8x505xf32>, vector<8x7xf32> -> vector<8x512xf32>
    %177 = arith.andi %42, %44 : vector<1x512xi1>
    %cst_42 = arith.constant 0.000000e+00 : f32
    %178 = vector.shape_cast %177 : vector<1x512xi1> to vector<1x512xi1>
    %179 = vector.broadcast %178 : vector<1x512xi1> to vector<8x512xi1>
    %180 = vector.broadcast %cst_42 : f32 to vector<8x512xf32>
    %181 = arith.select %179, %176, %180 : vector<8x512xi1>, vector<8x512xf32>
    %c120 = arith.constant 120 : index
    %c0_43 = arith.constant 0 : index
    %182 = vector.load %arg4[%c120, %c0_43] : memref<216x512xf32, #tpu.memory_space<vmem>>, vector<8x512xf32>
    tpu.vector_store %arg4[%c120, %c0_43], %181 {strides = array<i32>} : memref<216x512xf32, #tpu.memory_space<vmem>>, vector<8x512xf32>,
    %183 = vector.extract_strided_slice %1 {offsets = [0, 8], sizes = [8, 504], strides = [1, 1]} : vector<8x512xf32> to vector<8x504xf32>
    %184 = vector.extract_strided_slice %1 {offsets = [0, 0], sizes = [8, 8], strides = [1, 1]} : vector<8x512xf32> to vector<8x8xf32>
    %185 = tpu.concatenate %183, %184 in 1 : vector<8x504xf32>, vector<8x8xf32> -> vector<8x512xf32>
    %cst_44 = arith.constant 0.000000e+00 : f32
    %186 = vector.shape_cast %42 : vector<1x512xi1> to vector<1x512xi1>
    %187 = vector.broadcast %186 : vector<1x512xi1> to vector<8x512xi1>
    %188 = vector.broadcast %cst_44 : f32 to vector<8x512xf32>
    %189 = arith.select %187, %185, %188 : vector<8x512xi1>, vector<8x512xf32>
    %c128 = arith.constant 128 : index
    %c0_45 = arith.constant 0 : index
    %190 = vector.load %arg4[%c128, %c0_45] : memref<216x512xf32, #tpu.memory_space<vmem>>, vector<8x512xf32>
    tpu.vector_store %arg4[%c128, %c0_45], %189 {strides = array<i32>} : memref<216x512xf32, #tpu.memory_space<vmem>>, vector<8x512xf32>,
    %191 = vector.extract_strided_slice %1 {offsets = [0, 9], sizes = [8, 503], strides = [1, 1]} : vector<8x512xf32> to vector<8x503xf32>
    %192 = vector.extract_strided_slice %1 {offsets = [0, 0], sizes = [8, 9], strides = [1, 1]} : vector<8x512xf32> to vector<8x9xf32>
    %193 = tpu.concatenate %191, %192 in 1 : vector<8x503xf32>, vector<8x9xf32> -> vector<8x512xf32>
    %194 = arith.andi %42, %46 : vector<1x512xi1>
    %cst_46 = arith.constant 0.000000e+00 : f32
    %195 = vector.shape_cast %194 : vector<1x512xi1> to vector<1x512xi1>
    %196 = vector.broadcast %195 : vector<1x512xi1> to vector<8x512xi1>
    %197 = vector.broadcast %cst_46 : f32 to vector<8x512xf32>
    %198 = arith.select %196, %193, %197 : vector<8x512xi1>, vector<8x512xf32>
    %c136 = arith.constant 136 : index
    %c0_47 = arith.constant 0 : index
    %199 = vector.load %arg4[%c136, %c0_47] : memref<216x512xf32, #tpu.memory_space<vmem>>, vector<8x512xf32>
    tpu.vector_store %arg4[%c136, %c0_47], %198 {strides = array<i32>} : memref<216x512xf32, #tpu.memory_space<vmem>>, vector<8x512xf32>,
    %200 = vector.extract_strided_slice %1 {offsets = [0, 55], sizes = [8, 457], strides = [1, 1]} : vector<8x512xf32> to vector<8x457xf32>
    %201 = vector.extract_strided_slice %1 {offsets = [0, 0], sizes = [8, 55], strides = [1, 1]} : vector<8x512xf32> to vector<8x55xf32>
    %202 = tpu.concatenate %200, %201 in 1 : vector<8x457xf32>, vector<8x55xf32> -> vector<8x512xf32>
    %203 = arith.andi %38, %40 : vector<1x512xi1>
    %204 = arith.andi %203, %44 : vector<1x512xi1>
    %cst_48 = arith.constant 0.000000e+00 : f32
    %205 = vector.shape_cast %204 : vector<1x512xi1> to vector<1x512xi1>
    %206 = vector.broadcast %205 : vector<1x512xi1> to vector<8x512xi1>
    %207 = vector.broadcast %cst_48 : f32 to vector<8x512xf32>
    %208 = arith.select %206, %202, %207 : vector<8x512xi1>, vector<8x512xf32>
    %c144 = arith.constant 144 : index
    %c0_49 = arith.constant 0 : index
    %209 = vector.load %arg4[%c144, %c0_49] : memref<216x512xf32, #tpu.memory_space<vmem>>, vector<8x512xf32>
    tpu.vector_store %arg4[%c144, %c0_49], %208 {strides = array<i32>} : memref<216x512xf32, #tpu.memory_space<vmem>>, vector<8x512xf32>,
    %210 = vector.extract_strided_slice %1 {offsets = [0, 56], sizes = [8, 456], strides = [1, 1]} : vector<8x512xf32> to vector<8x456xf32>
    %211 = vector.extract_strided_slice %1 {offsets = [0, 0], sizes = [8, 56], strides = [1, 1]} : vector<8x512xf32> to vector<8x56xf32>
    %212 = tpu.concatenate %210, %211 in 1 : vector<8x456xf32>, vector<8x56xf32> -> vector<8x512xf32>
    %213 = arith.andi %38, %40 : vector<1x512xi1>
    %cst_50 = arith.constant 0.000000e+00 : f32
    %214 = vector.shape_cast %213 : vector<1x512xi1> to vector<1x512xi1>
    %215 = vector.broadcast %214 : vector<1x512xi1> to vector<8x512xi1>
    %216 = vector.broadcast %cst_50 : f32 to vector<8x512xf32>
    %217 = arith.select %215, %212, %216 : vector<8x512xi1>, vector<8x512xf32>
    %c152 = arith.constant 152 : index
    %c0_51 = arith.constant 0 : index
    %218 = vector.load %arg4[%c152, %c0_51] : memref<216x512xf32, #tpu.memory_space<vmem>>, vector<8x512xf32>
    tpu.vector_store %arg4[%c152, %c0_51], %217 {strides = array<i32>} : memref<216x512xf32, #tpu.memory_space<vmem>>, vector<8x512xf32>,
    %219 = vector.extract_strided_slice %1 {offsets = [0, 57], sizes = [8, 455], strides = [1, 1]} : vector<8x512xf32> to vector<8x455xf32>
    %220 = vector.extract_strided_slice %1 {offsets = [0, 0], sizes = [8, 57], strides = [1, 1]} : vector<8x512xf32> to vector<8x57xf32>
    %221 = tpu.concatenate %219, %220 in 1 : vector<8x455xf32>, vector<8x57xf32> -> vector<8x512xf32>
    %222 = arith.andi %38, %40 : vector<1x512xi1>
    %223 = arith.andi %222, %46 : vector<1x512xi1>
    %cst_52 = arith.constant 0.000000e+00 : f32
    %224 = vector.shape_cast %223 : vector<1x512xi1> to vector<1x512xi1>
    %225 = vector.broadcast %224 : vector<1x512xi1> to vector<8x512xi1>
    %226 = vector.broadcast %cst_52 : f32 to vector<8x512xf32>
    %227 = arith.select %225, %221, %226 : vector<8x512xi1>, vector<8x512xf32>
    %c160 = arith.constant 160 : index
    %c0_53 = arith.constant 0 : index
    %228 = vector.load %arg4[%c160, %c0_53] : memref<216x512xf32, #tpu.memory_space<vmem>>, vector<8x512xf32>
    tpu.vector_store %arg4[%c160, %c0_53], %227 {strides = array<i32>} : memref<216x512xf32, #tpu.memory_space<vmem>>, vector<8x512xf32>,
    %229 = vector.extract_strided_slice %1 {offsets = [0, 63], sizes = [8, 449], strides = [1, 1]} : vector<8x512xf32> to vector<8x449xf32>
    %230 = vector.extract_strided_slice %1 {offsets = [0, 0], sizes = [8, 63], strides = [1, 1]} : vector<8x512xf32> to vector<8x63xf32>
    %231 = tpu.concatenate %229, %230 in 1 : vector<8x449xf32>, vector<8x63xf32> -> vector<8x512xf32>
    %232 = arith.andi %38, %44 : vector<1x512xi1>
    %cst_54 = arith.constant 0.000000e+00 : f32
    %233 = vector.shape_cast %232 : vector<1x512xi1> to vector<1x512xi1>
    %234 = vector.broadcast %233 : vector<1x512xi1> to vector<8x512xi1>
    %235 = vector.broadcast %cst_54 : f32 to vector<8x512xf32>
    %236 = arith.select %234, %231, %235 : vector<8x512xi1>, vector<8x512xf32>
    %c168 = arith.constant 168 : index
    %c0_55 = arith.constant 0 : index
    %237 = vector.load %arg4[%c168, %c0_55] : memref<216x512xf32, #tpu.memory_space<vmem>>, vector<8x512xf32>
    tpu.vector_store %arg4[%c168, %c0_55], %236 {strides = array<i32>} : memref<216x512xf32, #tpu.memory_space<vmem>>, vector<8x512xf32>,
    %238 = vector.extract_strided_slice %1 {offsets = [0, 64], sizes = [8, 448], strides = [1, 1]} : vector<8x512xf32> to vector<8x448xf32>
    %239 = vector.extract_strided_slice %1 {offsets = [0, 0], sizes = [8, 64], strides = [1, 1]} : vector<8x512xf32> to vector<8x64xf32>
    %240 = tpu.concatenate %238, %239 in 1 : vector<8x448xf32>, vector<8x64xf32> -> vector<8x512xf32>
    %cst_56 = arith.constant 0.000000e+00 : f32
    %241 = vector.shape_cast %38 : vector<1x512xi1> to vector<1x512xi1>
    %242 = vector.broadcast %241 : vector<1x512xi1> to vector<8x512xi1>
    %243 = vector.broadcast %cst_56 : f32 to vector<8x512xf32>
    %244 = arith.select %242, %240, %243 : vector<8x512xi1>, vector<8x512xf32>
    %c176 = arith.constant 176 : index
    %c0_57 = arith.constant 0 : index
    %245 = vector.load %arg4[%c176, %c0_57] : memref<216x512xf32, #tpu.memory_space<vmem>>, vector<8x512xf32>
    tpu.vector_store %arg4[%c176, %c0_57], %244 {strides = array<i32>} : memref<216x512xf32, #tpu.memory_space<vmem>>, vector<8x512xf32>,
    %246 = vector.extract_strided_slice %1 {offsets = [0, 65], sizes = [8, 447], strides = [1, 1]} : vector<8x512xf32> to vector<8x447xf32>
    %247 = vector.extract_strided_slice %1 {offsets = [0, 0], sizes = [8, 65], strides = [1, 1]} : vector<8x512xf32> to vector<8x65xf32>
    %248 = tpu.concatenate %246, %247 in 1 : vector<8x447xf32>, vector<8x65xf32> -> vector<8x512xf32>
    %249 = arith.andi %38, %46 : vector<1x512xi1>
    %cst_58 = arith.constant 0.000000e+00 : f32
    %250 = vector.shape_cast %249 : vector<1x512xi1> to vector<1x512xi1>
    %251 = vector.broadcast %250 : vector<1x512xi1> to vector<8x512xi1>
    %252 = vector.broadcast %cst_58 : f32 to vector<8x512xf32>
    %253 = arith.select %251, %248, %252 : vector<8x512xi1>, vector<8x512xf32>
    %c184 = arith.constant 184 : index
    %c0_59 = arith.constant 0 : index
    %254 = vector.load %arg4[%c184, %c0_59] : memref<216x512xf32, #tpu.memory_space<vmem>>, vector<8x512xf32>
    tpu.vector_store %arg4[%c184, %c0_59], %253 {strides = array<i32>} : memref<216x512xf32, #tpu.memory_space<vmem>>, vector<8x512xf32>,
    %255 = vector.extract_strided_slice %1 {offsets = [0, 71], sizes = [8, 441], strides = [1, 1]} : vector<8x512xf32> to vector<8x441xf32>
    %256 = vector.extract_strided_slice %1 {offsets = [0, 0], sizes = [8, 71], strides = [1, 1]} : vector<8x512xf32> to vector<8x71xf32>
    %257 = tpu.concatenate %255, %256 in 1 : vector<8x441xf32>, vector<8x71xf32> -> vector<8x512xf32>
    %258 = arith.andi %38, %42 : vector<1x512xi1>
    %259 = arith.andi %258, %44 : vector<1x512xi1>
    %cst_60 = arith.constant 0.000000e+00 : f32
    %260 = vector.shape_cast %259 : vector<1x512xi1> to vector<1x512xi1>
    %261 = vector.broadcast %260 : vector<1x512xi1> to vector<8x512xi1>
    %262 = vector.broadcast %cst_60 : f32 to vector<8x512xf32>
    %263 = arith.select %261, %257, %262 : vector<8x512xi1>, vector<8x512xf32>
    %c192 = arith.constant 192 : index
    %c0_61 = arith.constant 0 : index
    %264 = vector.load %arg4[%c192, %c0_61] : memref<216x512xf32, #tpu.memory_space<vmem>>, vector<8x512xf32>
    tpu.vector_store %arg4[%c192, %c0_61], %263 {strides = array<i32>} : memref<216x512xf32, #tpu.memory_space<vmem>>, vector<8x512xf32>,
    %265 = vector.extract_strided_slice %1 {offsets = [0, 72], sizes = [8, 440], strides = [1, 1]} : vector<8x512xf32> to vector<8x440xf32>
    %266 = vector.extract_strided_slice %1 {offsets = [0, 0], sizes = [8, 72], strides = [1, 1]} : vector<8x512xf32> to vector<8x72xf32>
    %267 = tpu.concatenate %265, %266 in 1 : vector<8x440xf32>, vector<8x72xf32> -> vector<8x512xf32>
    %268 = arith.andi %38, %42 : vector<1x512xi1>
    %cst_62 = arith.constant 0.000000e+00 : f32
    %269 = vector.shape_cast %268 : vector<1x512xi1> to vector<1x512xi1>
    %270 = vector.broadcast %269 : vector<1x512xi1> to vector<8x512xi1>
    %271 = vector.broadcast %cst_62 : f32 to vector<8x512xf32>
    %272 = arith.select %270, %267, %271 : vector<8x512xi1>, vector<8x512xf32>
    %c200 = arith.constant 200 : index
    %c0_63 = arith.constant 0 : index
    %273 = vector.load %arg4[%c200, %c0_63] : memref<216x512xf32, #tpu.memory_space<vmem>>, vector<8x512xf32>
    tpu.vector_store %arg4[%c200, %c0_63], %272 {strides = array<i32>} : memref<216x512xf32, #tpu.memory_space<vmem>>, vector<8x512xf32>,
    %274 = vector.extract_strided_slice %1 {offsets = [0, 73], sizes = [8, 439], strides = [1, 1]} : vector<8x512xf32> to vector<8x439xf32>
    %275 = vector.extract_strided_slice %1 {offsets = [0, 0], sizes = [8, 73], strides = [1, 1]} : vector<8x512xf32> to vector<8x73xf32>
    %276 = tpu.concatenate %274, %275 in 1 : vector<8x439xf32>, vector<8x73xf32> -> vector<8x512xf32>
    %277 = arith.andi %38, %42 : vector<1x512xi1>
    %278 = arith.andi %277, %46 : vector<1x512xi1>
    %cst_64 = arith.constant 0.000000e+00 : f32
    %279 = vector.shape_cast %278 : vector<1x512xi1> to vector<1x512xi1>
    %280 = vector.broadcast %279 : vector<1x512xi1> to vector<8x512xi1>
    %281 = vector.broadcast %cst_64 : f32 to vector<8x512xf32>
    %282 = arith.select %280, %276, %281 : vector<8x512xi1>, vector<8x512xf32>
    %c208 = arith.constant 208 : index
    %c0_65 = arith.constant 0 : index
    %283 = vector.load %arg4[%c208, %c0_65] : memref<216x512xf32, #tpu.memory_space<vmem>>, vector<8x512xf32>
    tpu.vector_store %arg4[%c208, %c0_65], %282 {strides = array<i32>} : memref<216x512xf32, #tpu.memory_space<vmem>>, vector<8x512xf32>,
    %c0_66 = arith.constant 0 : index
    %c0_67 = arith.constant 0 : index
    %284 = vector.load %arg2[%c0_66, %c0_67] : memref<8x216xf32, #tpu.memory_space<vmem>>, vector<8x216xf32>
    %c0_68 = arith.constant 0 : index
    %c0_69 = arith.constant 0 : index
    %285 = vector.load %arg4[%c0_68, %c0_69] : memref<216x512xf32, #tpu.memory_space<vmem>>, vector<216x512xf32>
    %cst_70 = arith.constant dense<0.000000e+00> : vector<8x512xf32>
    %286 = tpu.matmul %284, %285, %cst_70 {dimension_numbers = #tpu.dot_dimension_numbers<[1], [0], [0], [1], [0, 0, 1, 1], [], []>} : vector<8x216xf32>, vector<216x512xf32>, vector<8x512xf32> -> vector<8x512xf32>
    %cst_71 = arith.constant dense<0.000000e+00> : vector<8xf32>
    %287 = vector.multi_reduction <add>, %286, %cst_71 [1] : vector<8x512xf32> to vector<8xf32>
    %288 = vector.shape_cast %287 : vector<8xf32> to vector<8x1xf32>
    %cst_72 = arith.constant 0.001953125 : f32
    %289 = vector.broadcast %cst_72 : f32 to vector<8x1xf32>
    %290 = arith.mulf %288, %289 : vector<8x1xf32>
    %291 = vector.broadcast %290 : vector<8x1xf32> to vector<8x512xf32>
    %292 = arith.subf %286, %291 : vector<8x512xf32>
    %293 = arith.mulf %292, %292 : vector<8x512xf32>
    %cst_73 = arith.constant dense<0.000000e+00> : vector<8xf32>
    %294 = vector.multi_reduction <add>, %293, %cst_73 [1] : vector<8x512xf32> to vector<8xf32>
    %295 = vector.shape_cast %294 : vector<8xf32> to vector<8x1xf32>
    %cst_74 = arith.constant 0.001953125 : f32
    %296 = vector.broadcast %cst_74 : f32 to vector<8x1xf32>
    %297 = arith.mulf %295, %296 : vector<8x1xf32>
    %cst_75 = arith.constant 9.99999974E-6 : f32
    %298 = vector.broadcast %cst_75 : f32 to vector<8x1xf32>
    %299 = arith.addf %297, %298 : vector<8x1xf32>
    %300 = math.rsqrt %299 : vector<8x1xf32>
    %301 = vector.broadcast %300 : vector<8x1xf32> to vector<8x512xf32>
    %302 = arith.mulf %292, %301 : vector<8x512xf32>
    %303 = math.absf %302 : vector<8x512xf32>
    %cst_76 = arith.constant 0.707106769 : f32
    %304 = vector.broadcast %cst_76 : f32 to vector<8x512xf32>
    %305 = arith.mulf %303, %304 : vector<8x512xf32>
    %cst_77 = arith.constant 0.327591091 : f32
    %306 = vector.broadcast %cst_77 : f32 to vector<8x512xf32>
    %307 = arith.mulf %306, %305 : vector<8x512xf32>
    %cst_78 = arith.constant 1.000000e+00 : f32
    %308 = vector.broadcast %cst_78 : f32 to vector<8x512xf32>
    %309 = arith.addf %308, %307 : vector<8x512xf32>
    %cst_79 = arith.constant 1.000000e+00 : f32
    %310 = vector.broadcast %cst_79 : f32 to vector<8x512xf32>
    %311 = arith.divf %310, %309 : vector<8x512xf32>
    %cst_80 = arith.constant 1.06140542 : f32
    %312 = vector.broadcast %cst_80 : f32 to vector<8x512xf32>
    %313 = arith.mulf %312, %311 : vector<8x512xf32>
    %cst_81 = arith.constant 1.45315206 : f32
    %314 = vector.broadcast %cst_81 : f32 to vector<8x512xf32>
    %315 = arith.subf %313, %314 : vector<8x512xf32>
    %316 = arith.mulf %315, %311 : vector<8x512xf32>
    %cst_82 = arith.constant 1.42141378 : f32
    %317 = vector.broadcast %cst_82 : f32 to vector<8x512xf32>
    %318 = arith.addf %316, %317 : vector<8x512xf32>
    %319 = arith.mulf %318, %311 : vector<8x512xf32>
    %cst_83 = arith.constant 0.284496725 : f32
    %320 = vector.broadcast %cst_83 : f32 to vector<8x512xf32>
    %321 = arith.subf %319, %320 : vector<8x512xf32>
    %322 = arith.mulf %321, %311 : vector<8x512xf32>
    %cst_84 = arith.constant 0.254829586 : f32
    %323 = vector.broadcast %cst_84 : f32 to vector<8x512xf32>
    %324 = arith.addf %322, %323 : vector<8x512xf32>
    %325 = arith.mulf %324, %311 : vector<8x512xf32>
    %cst_85 = arith.constant 0.000000e+00 : f32
    %326 = vector.broadcast %cst_85 : f32 to vector<8x512xf32>
    %327 = arith.subf %326, %305 : vector<8x512xf32>
    %328 = arith.mulf %327, %305 : vector<8x512xf32>
    %329 = math.exp %328 : vector<8x512xf32>
    %330 = arith.mulf %325, %329 : vector<8x512xf32>
    %cst_86 = arith.constant 1.000000e+00 : f32
    %331 = vector.broadcast %cst_86 : f32 to vector<8x512xf32>
    %332 = arith.subf %331, %330 : vector<8x512xf32>
    %cst_87 = arith.constant 0.000000e+00 : f32
    %333 = vector.broadcast %cst_87 : f32 to vector<8x512xf32>
    %334 = arith.cmpf oge, %302, %333 : vector<8x512xf32>
    %cst_88 = arith.constant 0.000000e+00 : f32
    %335 = vector.broadcast %cst_88 : f32 to vector<8x512xf32>
    %336 = arith.subf %335, %332 : vector<8x512xf32>
    %337 = arith.select %334, %332, %336 : vector<8x512xi1>, vector<8x512xf32>
    %cst_89 = arith.constant 5.000000e-01 : f32
    %338 = vector.broadcast %cst_89 : f32 to vector<8x512xf32>
    %339 = arith.mulf %338, %302 : vector<8x512xf32>
    %cst_90 = arith.constant 1.000000e+00 : f32
    %340 = vector.broadcast %cst_90 : f32 to vector<8x512xf32>
    %341 = arith.addf %340, %337 : vector<8x512xf32>
    %342 = arith.mulf %339, %341 : vector<8x512xf32>
    %c0_91 = arith.constant 0 : index
    %c0_92 = arith.constant 0 : index
    %c0_93 = arith.constant 0 : index
    %343 = vector.load %arg3[%c0_91, %c0_92, %c0_93] : memref<1x8x512xf32, #tpu.memory_space<vmem>>, vector<1x8x512xf32>
    %344 = vector.shape_cast %343 : vector<1x8x512xf32> to vector<8x512xf32>
    %345 = vector.shape_cast %342 : vector<8x512xf32> to vector<1x8x512xf32>
    tpu.vector_store %arg3[%c0_91, %c0_92, %c0_93], %345 {strides = array<i32>} : memref<1x8x512xf32, #tpu.memory_space<vmem>>, vector<1x8x512xf32>,
    return
  }
  func.func @transform_0(%arg0: i32) -> (i32, i32, i32) {
    %c0_i32 = arith.constant 0 : i32
    %c0_i32_0 = arith.constant 0 : i32
    %c0_i32_1 = arith.constant 0 : i32
    return %arg0, %c0_i32, %c0_i32_0 : i32, i32, i32
  }
  func.func @transform_1(%arg0: i32) -> (i32, i32) {
    %c0_i32 = arith.constant 0 : i32
    %c0_i32_0 = arith.constant 0 : i32
    %c0_i32_1 = arith.constant 0 : i32
    return %c0_i32, %c0_i32_0 : i32, i32
  }
  func.func @transform_2(%arg0: i32) -> (i32, i32, i32) {
    %c0_i32 = arith.constant 0 : i32
    %c0_i32_0 = arith.constant 0 : i32
    %c0_i32_1 = arith.constant 0 : i32
    return %arg0, %c0_i32, %c0_i32_0 : i32, i32, i32
  }
}

</mosaic_0001>

<bundles_post_ra>
// kernel: tpu_custom_call.1
= control target key start
LH: loop header
LB: loop body
LE: loop exit
PB: predicated region body
PF: predicated region fallthrough
CT: control target
= control target key end

     0   :  { %6 = vsyncpa [#allocation3], 0  ;;  %s106_s0 = inlined_call_operand.hbm [shape: f32[8,128], index: 0, kind: input, shape index: {}]   ;;  %s107_s1 = inlined_call_operand.hbm [shape: f32[8,128], index: 1, kind: output, shape index: {}]  }
   0x1   :  { %7 = vsyncpa [#allocation4], 0  ;;  %s87_s6 = smov [#allocation2]  }
   0x2   :  { %s14_s7 = sshll.u32 %s87_s6, 4  ;;  %s15_s7 = int_to_ptr.vmem [resolvable:$true] %s14_s7 }
   0x3   :  { %s51_s8 = scalar_lea.vmem %s15_s7, 128  ;;  %p56_p1 = scmp.lt.s32.totalorder %s15_s7, %s15_s7 }
   0x4   :  { %p52_p0 = scmp.ne.s32.totalorder %s15_s7, %s51_s8  ;;  %p57_p2 = scmp.lt.s32.totalorder %s51_s8, %s51_s8 }
   0x6   :  { %p58_p3 = por %p57_p2, %p56_p1 }
   0x8   :  { %p59_p4 = pnand %p58_p3, %p52_p0 }
   0xa   :  { %62 = shalt.err (!%p59_p4)
}
   0xb   :  { %17 = dma.hbm_to_vmem [thread:$0]  %s106_s0, 128, %s15_s7, [#allocation3]  }
   0xc   :  { %83 = dma.done.wait [#allocation3], 128  }
   0xd   :  { %84 = vsyncadd [#allocation3], 4294967168  ;;  %v21_v0 = vld [vmem:[#allocation2] sm:$0xff]  ;;  %s88_s11 = smov 3   ;;  %s89_s12 = smov [#allocation5]  }
   0xe   :  { %22 = vrot.lane.b32.xlu0 %v21_v0, %s88_s11  ;;  %s31_s13 = sshll.u32 %s89_s12, 4  ;;  %s32_s13 = int_to_ptr.vmem [resolvable:$true] %s31_s13 }
   0xf   :  { %s63_s14 = scalar_lea.vmem %s32_s13, 128  ;;  %p68_p6 = scmp.lt.s32.totalorder %s32_s13, %s32_s13 }
  0x10   :  { %p64_p5 = scmp.ne.s32.totalorder %s32_s13, %s63_s14  ;;  %p69_p7 = scmp.lt.s32.totalorder %s63_s14, %s63_s14 }
  0x12   :  { %p70_p8 = por %p69_p7, %p68_p6 }
  0x14   :  { %p71_p9 = pnand %p70_p8, %p64_p5 }
  0x80   :  { %v23_v1 = vpop.permute.xlu0 %22 }
  0x81   :  { %24 = vst [vmem:[#allocation5] sm:$0xff] %v23_v1 }
  0x82   :  { %74 = shalt.err (!%p71_p9)
}
  0x83   :  { %34 = dma.vmem_to_hbm [thread:$0]  %s32_s13, 128, %s107_s1, [#allocation4]  }
  0x84   :  { %85 = dma.done.wait [#allocation4], 128  }
  0x85   :  { %86 = vsyncadd [#allocation4], 4294967168 }
  0x86   :  { %38 = vsyncpa [#allocation3], 1 }
  0x87   :  { %39 = vsyncpa [#allocation4], 1 }

// kernel: tpu_custom_call.1
= control target key start
LH: loop header
LB: loop body
LE: loop exit
PB: predicated region body
PF: predicated region fallthrough
CT: control target
= control target key end

     0   :  { %7 = vsyncpa [#allocation4], 0  ;;  %s2947_s0 = inlined_call_operand.hbm [shape: f32[2,8,512], index: 0, kind: input, shape index: {}]   ;;  %s2948_s1 = inlined_call_operand.hbm [shape: f32[8,216], index: 1, kind: input, shape index: {}]   ;;  %s2949_s2 = inlined_call_operand.hbm [shape: f32[2,8,512], index: 2, kind: output, shape index: {}]  }
   0x1   :  { %9 = vsyncpa [#allocation4 + $0x1], 0 }
   0x2   :  { %10 = vsyncpa [#allocation7], 0 }
   0x3   :  { %11 = vsyncpa [#allocation5], 0 }
   0x4   :  { %13 = vsyncpa [#allocation5 + $0x1], 0  ;;  %s1978_s9 = smov 0   ;;  %s1980_s10 = smov 0  }
   0x5   :  { %s1982_s11 = smov 0   ;;  %s1984_s12 = smov 0  }
   0x6 LB: > { %s1999_s13 = sadd.s32 4294967295, %s1941_s12   ;;  %s1601_s14 = sadd.s32 4294967294, %s1941_s12   ;;  %s1941_s12 = sphi %s1984_s12, %s3182_s12   ;;  %s1937_s11 = sphi %s1982_s11, %s3181_s11   ;;  %s1933_s10 = sphi %s1980_s10, %s3180_s10   ;;  %s1929_s9 = sphi %s1978_s9, %s3179_s9  }
   0x7   : > { %p39_p0 = scmp.ne.s32.totalorder %s1933_s10, %s1929_s9  ;;  %p2950_p1 = scmp.eq.s32.totalorder %s1999_s13, 0 }
   0x8   : > { %p90_p3 = scmp.eq.s32.totalorder %s1601_s14, 1  ;;  %p1602_p5 = scmp.ge.s32.totalorder %s1941_s12, 1 }
   0x9   : > { %p2008_p4 = por %p2950_p1, %p39_p0  ;;  %p97_p7 = scmp.lt.s32.totalorder %s1941_s12, 3 }
   0xa   : > { %p2013_p6 = por %p90_p3, %p39_p0  ;;  %s1943_s18 = smov [#allocation6]  }
   0xb   : > { %s3020_s15 = scalar_select %p2008_p4, 1, 0 }
   0xc   : > { %s3021_s16 = scalar_select %p2013_p6, 1, 0 }
   0xd   : > { %p2018_p8 = pnand %p1602_p5, %p97_p7  ;;  %s110_s19 = sshll.u32 %s1943_s18, 4  ;;  %s111_s19 = int_to_ptr.vmem [resolvable:$true] %s110_s19 }
   0xe   : > { %s2026_s20 = sadd.s32 1, %s1941_s12   ;;  %s26_s24 = sadd.s32 1, %s1937_s11 }
   0xf   : > { %s3022_s17 = scalar_select %p2018_p8, 1, 0 }
  0x10   : > { %p1735_p10 = pneg %p2018_p8  ;;  %s23_s22 = ssub.s32 %s1941_s12, %s2026_s20 }
  0x11   : > { %p2036_p12 = scmp.eq.s32.totalorder %s23_s22, 0  ;;  %p33_p13 = scmp.ne.s32.totalorder %s1937_s11, %s1933_s10 }
  0x12   : > { %p2030_p11 = pnand %p1735_p10, %p2950_p1  ;;  %s1830_s25 = scalar_lea.vmem %s111_s19, 256 }
  0x13   : > { %p1831_p3 = scmp.ne.s32.totalorder %s111_s19, %s1830_s25  ;;  %p1838_p9 = scmp.lt.s32.totalorder %s111_s19, %s111_s19 }
  0x14   : > { %p1821_p0 = pneg %p2030_p11  ;;  %p1839_p2 = scmp.lt.s32.totalorder %s1830_s25, %s1830_s25 }
  0x16   : > { %p1833_p5 = pnand %p1831_p3, %p1821_p0  ;;  %p1840_p10 = por %p1839_p2, %p1838_p9 }
  0x18   : > { %p1834_p7 = pneg %p1833_p5 }
  0x1a   : > { %p1841_p1 = pnand %p1840_p10, %p1834_p7 }
  0x1c   : > { %1844 = shalt.err (!%p1841_p1)
}
  0x1d   : > { %1738 = dma.hbm_to_vmem [thread:$0]  (!%p2030_p11), %s2948_s1, 256, %s111_s19, [#allocation7]  }
  0x1e   : > { %s2053_s28 = scalar_select %p2036_p12, %s1937_s11, %s26_s24  }
  0x1f   : > { %p34_p1 = scmp.eq.s32.totalorder %s1941_s12, 0  ;;  %p3025_p2 = scmp.eq.s32.totalorder %s1999_s13, 1 }
  0x20   : > { %p1748_p0 = scmp.lt.s32.totalorder %s1941_s12, 2  ;;  %s121_s30 = sand.u32 1, %s1937_s11  }
  0x21   : > { %p2061_p9 = por %p3025_p2, %p33_p13  ;;  %p35_p3 = por %p34_p1, %p33_p13 }
  0x22   : > { %s1605_s3 = sshll.u32 %s121_s30, 5  ;;  %s1627_s4 = sshll.u32 %s1941_s12, 9 }
  0x23   : > { %s3026_s29 = scalar_select %p2061_p9, 1, 0 }
  0x24   : > { %s2074_s7 = scalar_lea.hbm %s2947_s0, %s1627_s4  ;;  %s125_s8 = scalar_lea.vmem [#allocation3], %s1605_s3 }
  0x25   : > { %s133_s14 = sshll.u32 %s125_s8, 4  ;;  %p2076_p11 = pnand %p1748_p0, %p35_p3  ;;  %s134_s14 = int_to_ptr.vmem [resolvable:$true] %s133_s14 }
  0x26   : > { %s122_s19 = scalar_lea.sflag [#allocation4], %s121_s30  ;;  %s1845_s21 = scalar_lea.hbm %s2074_s7, 512 }
  0x27   : > { %p1846_p12 = scmp.ne.s32.totalorder %s2074_s7, %s1845_s21  ;;  %p1847_p13 = pneg %p2076_p11 }
  0x28   : > { %s1850_s24 = scalar_lea.hbm %s2947_s0, 1024  ;;  %p1851_p10 = scmp.lt.s32.totalorder %s2074_s7, %s2947_s0 }
  0x29   : > { %p1848_p5 = pnand %p1847_p13, %p1846_p12  ;;  %p1852_p1 = scmp.lt.s32.totalorder %s1850_s24, %s1845_s21 }
  0x2b   : > { %p1849_p7 = pneg %p1848_p5  ;;  %p1853_p2 = por %p1852_p1, %p1851_p10 }
  0x2d   : > { %p1854_p0 = pnand %p1853_p2, %p1849_p7 }
  0x2f   : > { %1857 = shalt.err (!%p1854_p0)
}
  0x30   : > { %s1858_s27 = scalar_lea.vmem %s134_s14, 512  ;;  %s1944_s30 = smov [#allocation3]  }
  0x31   : > { %p1859_p3 = scmp.ne.s32.totalorder %s134_s14, %s1858_s27  ;;  %s1863_s3 = sshll.u32 %s1944_s30, 4  ;;  %s1864_s3 = int_to_ptr.vmem [resolvable:$false] %s1863_s3 }
  0x32   : > { %s1865_s4 = scalar_lea.vmem %s1864_s3, 1024  ;;  %p1866_p12 = scmp.lt.s32.totalorder %s134_s14, %s1864_s3 }
  0x33   : > { %p1861_p6 = pnand %p1859_p3, %p1847_p13  ;;  %p1867_p5 = scmp.lt.s32.totalorder %s1865_s4, %s1858_s27 }
  0x35   : > { %p1862_p9 = pneg %p1861_p6  ;;  %p1868_p4 = por %p1867_p5, %p1866_p12 }
  0x37   : > { %p1869_p8 = pnand %p1868_p4, %p1862_p9 }
  0x39   : > { %1872 = shalt.err (!%p1869_p8)
}
  0x3a   : > { %1742 = dma.hbm_to_vmem [thread:$0]  (!%p2076_p11), %s2074_s7, 512, %s134_s14, %s122_s19  }
  0x3b   : > { %p3028_p7 = scmp.ne.s32.totalorder %s3022_s17, 0 }
  0x3d   : > { %142 = sbr.rel (%p3028_p7) target bundleno = 905 (0x389), region = 28 }
  0x42   : > { %s2097_s5 = sand.u32 1, %s1933_s10   ;;  %p3029_p4 = scmp.ne.s32.totalorder %s3020_s15, 0 }
  0x43   : > { %s1609_s6 = sshll.u32 %s2097_s5, 5  ;;  %s145_s8 = scalar_lea.sflag [#allocation4], %s2097_s5 }
  0x44   : > { %s148_s21 = scalar_lea.vmem [#allocation3], %s1609_s6 }
  0x45   : > { %1916 = dma.done.wait (%p3029_p4), %s145_s8, 512  }
  0x46   : > { %1918 = vsyncadd (%p3029_p4), %s145_s8, 4294966784  ;;  %p3030_p6 = scmp.eq.s32.totalorder %s1999_s13, 0 }
  0x48   : > { %1920 = dma.done.wait (%p3030_p6), [#allocation7], 256   ;;  %p3031_p8 = pmov %p3030_p6 }
  0x49   : > { %v2111_v0 = vld [vmem:[%s148_s21 + $0x8] sm:$0xff]  ;;  %v2113_v1 = vld [vmem:[%s148_s21] sm:$0xff]  ;;  %s1945_s17 = smov 121   ;;  %v2117_v2 = vld [vmem:[%s148_s21 + $0x10] sm:$0xff]  ;;  %s1946_s15 = smov 127   ;;  %v177_v4 = vlaneseq  ;;  %v3032_v13 = vmov 0 }
  0x4a   : > { %1922 = vsyncadd (%p3031_p8), [#allocation7], 4294967040  ;;  %828 = vrot.lane.b32.xlu0 %v2111_v0, %s1945_s17  ;;  %826 = vrot.lane.b32.xlu1 %v2113_v1, %s1945_s17  ;;  %v2123_v3 = vld [vmem:[%s148_s21 + $0x18] sm:$0xff]  ;;  %s1947_s7 = smov 1   ;;  %s1948_s14 = smov 7   ;;  %v3034_v14 = vmov 0 }
  0x4b   : > { %s1949_s18 = smov 8   ;;  %s1950_s19 = smov 9   ;;  %v2171_v5 = vand.u32 127, %v177_v4  ;;  %v3036_v16 = vmov 0  ;;  %v3040_v19 = vmov 0  ;;  %vm834_vm5 = vcmask 990208  }
  0x4c   : > { %s1951_s22 = smov 55   ;;  %s1952_s23 = smov 56   ;;  %vm2955_vm7 = vcmask 1039360   ;;  %v3046_v32 = vmov 0  ;;  %v3048_v33 = vmov 0  ;;  %v1113_v34 = vld [vmem:[#allocation6 + $0x8] sm:$0xff] }
  0x4d   : > { %s1953_s24 = smov 57   ;;  %s1954_s25 = smov 63   ;;  %v2176_v6 = vadd.s32 128, %v2171_v5  ;;  %v186_v9 = vand.u32 63, %v2171_v5  ;;  %v234_v10 = vand.u32 7, %v2171_v5  ;;  %v2197_v15 = vadd.s32 384, %v2171_v5 }
  0x4e   : > { %830 = vrot.lane.b32.xlu0 %v2117_v2, %s1945_s17  ;;  %794 = vrot.lane.b32.xlu1 %v2111_v0, %s1946_s15  ;;  %s1955_s26 = smov 64   ;;  %s1956_s27 = smov 65   ;;  %v2210_v18 = vadd.s32 256, %v2171_v5  ;;  %vm1222_vm12 = vcmask 719872   ;;  %v3050_v37 = vmov 0  ;;  %v3052_v38 = vmov 0 }
  0x4f   : > { %s1957_s30 = smov 71   ;;  %s1958_s3 = smov 72   ;;  %v193_v7 = vand.u32 63, %v2176_v6  ;;  %v241_v8 = vand.u32 7, %v2176_v6  ;;  %vm2201_vm2 = vcmp.lt.s32.totalorder %v186_v9, 56  ;;  %vm2205_vm3 = vcmp.ge.s32.totalorder %v234_v10, 1  ;;  %1612 = vmatprep.mubr.msk.f32.mxu0 %vm1222_vm12, %v1113_v34  ;;  %1613 = vmatprep.mubr.msk.f32.mxu1 %vm1222_vm12, %v1113_v34 }
  0x50   : > { %s1959_s4 = smov 73   ;;  %v3037_v16 = vsel %vm2201_vm2, 4294967295, %v3036_v16  ;;  %vm2954_vm6 = vmand %vm2201_vm2, %vm2205_vm3  ;;  %v207_v22 = vand.u32 63, %v2197_v15  ;;  %v255_v23 = vand.u32 7, %v2197_v15  ;;  %v200_v25 = vand.u32 63, %v2210_v18  ;;  %s1960_s8 = smov 119  }
  0x51   : > { %vm2188_vm0 = vcmp.lt.s32.totalorder %v193_v7, 56  ;;  %vm2192_vm1 = vcmp.ge.s32.totalorder %v241_v8, 1  ;;  %v248_v26 = vand.u32 7, %v2210_v18  ;;  %vm2243_vm8 = vcmp.lt.s32.totalorder %v241_v8, 7  ;;  %s1961_s21 = smov 120   ;;  %p3176_p11 = scmp.ne.s32.totalorder %s3026_s29, 0 }
  0x52   : > { %796 = vrot.lane.b32.xlu0 %v2117_v2, %s1946_s15  ;;  %792 = vrot.lane.b32.xlu1 %v2113_v1, %s1946_s15  ;;  %v3033_v13 = vsel %vm2188_vm0, 4294967295, %v3032_v13  ;;  %v3035_v14 = vsel %vm2192_vm1, 4294967295, %v3034_v14  ;;  %vm2218_vm4 = vmand %vm2188_vm0, %vm2192_vm1  ;;  %vm2247_vm9 = vcmp.lt.s32.totalorder %v234_v10, 7  ;;  %vm2253_vm10 = vcmp.lt.s32.totalorder %v207_v22, 56 }
  0x53   : > { %v3041_v19 = vsel %vm2218_vm4, 4294967295, %v3040_v19  ;;  %v3047_v32 = vsel %vm2253_vm10, 4294967295, %v3046_v32  ;;  %vm2257_vm11 = vcmp.ge.s32.totalorder %v255_v23, 1  ;;  %vm2265_vm13 = vcmp.lt.s32.totalorder %v200_v25, 56 }
  0x54   : > { %v3049_v33 = vsel %vm2257_vm11, 4294967295, %v3048_v33  ;;  %v3051_v37 = vsel %vm2265_vm13, 4294967295, %v3050_v37  ;;  %vm2269_vm14 = vcmp.ge.s32.totalorder %v248_v26, 1  ;;  %vm2960_vm15 = vmand %vm2253_vm10, %vm2257_vm11  ;;  %v3054_v41 = vmov 0 }
  0x55   : > { %v3053_v38 = vsel %vm2269_vm14, 4294967295, %v3052_v38  ;;  %vm2288_vm12 = vmand %vm2265_vm13, %vm2269_vm14  ;;  %vm2312_vm10 = vcmp.lt.s32.totalorder %v248_v26, 7  ;;  %v3060_v50 = vmov 0  ;;  %v3062_v53 = vmov 0 }
  0x56   : > { %832 = vrot.lane.b32.xlu0 %v2123_v3, %s1945_s17  ;;  %757 = vrot.lane.b32.xlu1 %v2113_v1, %s1947_s7  ;;  %v3055_v41 = vsel %vm2288_vm12, 4294967295, %v3054_v41  ;;  %v3061_v50 = vsel %vm2312_vm10, 4294967295, %v3060_v50  ;;  %v3064_v55 = vmov 0  ;;  %v3066_v56 = vmov 0  ;;  %s1628_s17 = sshll.u32 %s1999_s13, 9  ;;  %s1507_s13 = scalar_lea.sflag [#allocation5], %s2097_s5 }
  0x57   : > { %v3070_v6 = vmov 0  ;;  %v3076_v18 = vmov 0 }
  0x5a   : > { %759 = vrot.lane.b32.xlu0 %v2111_v0, %s1947_s7  ;;  %798 = vrot.lane.b32.xlu1 %v2123_v3, %s1946_s15  ;;  %s172_s15 = scalar_lea.vmem [#allocation8], %s1609_s6 }
  0x5e   : > { %754 = vrot.lane.b32.xlu0 %v2123_v3, %s1947_s7  ;;  %719 = vrot.lane.b32.xlu1 %v2113_v1, %s1948_s14 }
  0x62   : > { %721 = vrot.lane.b32.xlu0 %v2111_v0, %s1948_s14  ;;  %716 = vrot.lane.b32.xlu1 %v2123_v3, %s1948_s14 }
  0x66   : > { %685 = vrot.lane.b32.xlu0 %v2113_v1, %s1949_s18  ;;  %687 = vrot.lane.b32.xlu1 %v2111_v0, %s1949_s18 }
  0x6a   : > { %761 = vrot.lane.b32.xlu0 %v2117_v2, %s1947_s7  ;;  %682 = vrot.lane.b32.xlu1 %v2123_v3, %s1949_s18  ;;  %s1521_s7 = sshll.u32 %s172_s15, 4  ;;  %s1522_s7 = int_to_ptr.vmem [resolvable:$true] %s1521_s7 }
  0x6b   : > { %s1873_s6 = scalar_lea.vmem %s1522_s7, 512 }
  0x6c   : > { %p1874_p9 = scmp.ne.s32.totalorder %s1522_s7, %s1873_s6 }
  0x6e   : > { %647 = vrot.lane.b32.xlu0 %v2113_v1, %s1950_s19  ;;  %649 = vrot.lane.b32.xlu1 %v2111_v0, %s1950_s19  ;;  %p1875_p13 = pnand %p1874_p9, %p3176_p11 }
  0x70   : > { %p1876_p10 = pneg %p1875_p13 }
  0x72   : > { %723 = vrot.lane.b32.xlu0 %v2117_v2, %s1948_s14  ;;  %644 = vrot.lane.b32.xlu1 %v2123_v3, %s1950_s19 }
  0x76   : > { %609 = vrot.lane.b32.xlu0 %v2113_v1, %s1951_s22  ;;  %611 = vrot.lane.b32.xlu1 %v2111_v0, %s1951_s22 }
  0x7a   : > { %689 = vrot.lane.b32.xlu0 %v2117_v2, %s1949_s18  ;;  %606 = vrot.lane.b32.xlu1 %v2123_v3, %s1951_s22 }
  0x7e   : > { %575 = vrot.lane.b32.xlu0 %v2113_v1, %s1952_s23  ;;  %577 = vrot.lane.b32.xlu1 %v2111_v0, %s1952_s23 }
  0x82   : > { %651 = vrot.lane.b32.xlu0 %v2117_v2, %s1950_s19  ;;  %572 = vrot.lane.b32.xlu1 %v2123_v3, %s1952_s23  ;;  %s2910_s19 = scalar_lea.hbm %s2949_s2, %s1628_s17 }
  0x86   : > { %533 = vrot.lane.b32.xlu0 %v2113_v1, %s1953_s24  ;;  %535 = vrot.lane.b32.xlu1 %v2111_v0, %s1953_s24 }
  0x8a   : > { %613 = vrot.lane.b32.xlu0 %v2117_v2, %s1951_s22  ;;  %530 = vrot.lane.b32.xlu1 %v2123_v3, %s1953_s24  ;;  %s1962_s22 = smov [#allocation8]  }
  0x8e   : > { %495 = vrot.lane.b32.xlu0 %v2113_v1, %s1954_s25  ;;  %497 = vrot.lane.b32.xlu1 %v2111_v0, %s1954_s25 }
  0x92   : > { %579 = vrot.lane.b32.xlu0 %v2117_v2, %s1952_s23  ;;  %492 = vrot.lane.b32.xlu1 %v2123_v3, %s1954_s25  ;;  %s1877_s23 = sshll.u32 %s1962_s22, 4  ;;  %s1878_s23 = int_to_ptr.vmem [resolvable:$false] %s1877_s23 }
  0x93   : > { %p1880_p1 = scmp.lt.s32.totalorder %s1522_s7, %s1878_s23 }
  0x96   : > { %461 = vrot.lane.b32.xlu0 %v2113_v1, %s1955_s26  ;;  %463 = vrot.lane.b32.xlu1 %v2111_v0, %s1955_s26 }
  0x9a   : > { %537 = vrot.lane.b32.xlu0 %v2117_v2, %s1953_s24  ;;  %458 = vrot.lane.b32.xlu1 %v2123_v3, %s1955_s26  ;;  %s1879_s24 = scalar_lea.vmem %s1878_s23, 1024 }
  0x9b   : > { %p1881_p2 = scmp.lt.s32.totalorder %s1879_s24, %s1873_s6 }
  0x9d   : > { %p1882_p0 = por %p1881_p2, %p1880_p1 }
  0x9e   : > { %423 = vrot.lane.b32.xlu0 %v2113_v1, %s1956_s27  ;;  %425 = vrot.lane.b32.xlu1 %v2111_v0, %s1956_s27 }
  0x9f   : > { %p1883_p3 = pnand %p1882_p0, %p1876_p10 }
  0xa2   : > { %499 = vrot.lane.b32.xlu0 %v2117_v2, %s1954_s25  ;;  %420 = vrot.lane.b32.xlu1 %v2123_v3, %s1956_s27 }
  0xa6   : > { %385 = vrot.lane.b32.xlu0 %v2113_v1, %s1957_s30  ;;  %387 = vrot.lane.b32.xlu1 %v2111_v0, %s1957_s30 }
  0xaa   : > { %465 = vrot.lane.b32.xlu0 %v2117_v2, %s1955_s26  ;;  %382 = vrot.lane.b32.xlu1 %v2123_v3, %s1957_s30 }
  0xae   : > { %351 = vrot.lane.b32.xlu0 %v2113_v1, %s1958_s3  ;;  %353 = vrot.lane.b32.xlu1 %v2111_v0, %s1958_s3 }
  0xb2   : > { %427 = vrot.lane.b32.xlu0 %v2117_v2, %s1956_s27  ;;  %348 = vrot.lane.b32.xlu1 %v2123_v3, %s1958_s3 }
  0xb6   : > { %309 = vrot.lane.b32.xlu0 %v2113_v1, %s1959_s4  ;;  %311 = vrot.lane.b32.xlu1 %v2111_v0, %s1959_s4 }
  0xba   : > { %389 = vrot.lane.b32.xlu0 %v2117_v2, %s1957_s30  ;;  %303 = vrot.lane.b32.xlu1 %v2123_v3, %s1959_s4 }
  0xbc   : > { %v829_v11 = vpop.permute.xlu0 %828  ;;  %v827_v12 = vpop.permute.xlu1 %826 }
  0xbd   : > { %v835_v27 = vsel %vm834_vm5, %v827_v12, %v829_v11 }
  0xbe   : > { %355 = vrot.lane.b32.xlu0 %v2117_v2, %s1958_s3  ;;  %313 = vrot.lane.b32.xlu1 %v2117_v2, %s1959_s4 }
  0xc0   : > { %v831_v20 = vpop.permute.xlu0 %830  ;;  %v795_v21 = vpop.permute.xlu1 %794 }
  0xc1   : > { %v836_v24 = vsel %vm834_vm5, %v829_v11, %v831_v20  ;;  %v3074_v11 = vmov 0 }
  0xc2   : > { %1629 = vmatprep.subr.msk.mxu0 %vm2218_vm4, %v836_v24  ;;  %900 = vrot.lane.b32.xlu0 %v2111_v0, %s1960_s8  ;;  %vm2972_vm4 = vcmask 64512   ;;  %v3083_v24 = vmov 0 }
  0xc3   : > { %1630 = vmatpush1.msk.msra.mxu0 %vm2954_vm6, %v835_v27  ;;  %902 = vrot.lane.b32.xlu1 %v2117_v2, %s1960_s8  ;;  %vm2963_vm6 = vcmask 7168  }
  0xc4   : > { %v797_v29 = vpop.permute.xlu0 %796  ;;  %v793_v30 = vpop.permute.xlu1 %792 }
  0xc5   : > { %v802_v35 = vsel %vm2955_vm7, %v795_v21, %v797_v29  ;;  %v801_v36 = vsel %vm2955_vm7, %v793_v30, %v795_v21  ;;  %vm2305_vm7 = vcmp.lt.s32.totalorder %v255_v23, 7 }
  0xc6   : > { %898 = vrot.lane.b32.xlu0 %v2113_v1, %s1960_s8  ;;  %1631 = vmatprep.subr.msk.mxu0 %vm2243_vm8, %v802_v35 }
  0xc7   : > { %1632 = vmatpush1.msk.msra.mxu0 %vm2247_vm9, %v801_v36  ;;  %866 = vrot.lane.b32.xlu1 %v2111_v0, %s1961_s21 }
  0xc8   : > { %v833_v39 = vpop.permute.xlu0 %832  ;;  %v758_v40 = vpop.permute.xlu1 %757  ;;  %1230 = vmatprep.subr.mxu0 %v2111_v0 }
  0xc9   : > { %v843_v42 = vsel %vm834_vm5, %v833_v39, %v827_v12  ;;  %v837_v43 = vsel %vm834_vm5, %v831_v20, %v833_v39  ;;  %1231 = vmatpush1.msra.mxu0 %v2113_v1  ;;  %vm3058_vm5 = vcmask 1039360  }
  0xca   : > { %868 = vrot.lane.b32.xlu0 %v2117_v2, %s1961_s21  ;;  %1678 = vmatprep.subr.msk.mxu1 %vm2960_vm15, %v843_v42  ;;  %vm3059_vm13 = vmmov %vm3058_vm5  ;;  %vm2966_vm15 = vcmask 56320  }
  0xcb   : > { %1679 = vmatpush1.msk.msra.mxu1 %vm2288_vm12, %v837_v43  ;;  %864 = vrot.lane.b32.xlu1 %v2113_v1, %s1961_s21 }
  0xcc   : > { %v760_v44 = vpop.permute.xlu0 %759  ;;  %v799_v45 = vpop.permute.xlu1 %798 }
  0xcd   : > { %v764_v47 = vsel %vm2963_vm6, %v758_v40, %v760_v44  ;;  %v803_v48 = vsel %vm3058_vm5, %v797_v29, %v799_v45  ;;  %v809_v49 = vsel %vm3059_vm13, %v799_v45, %v793_v30  ;;  %vm2327_vm13 = vcmp.ge.s32.totalorder %v193_v7, 8 }
  0xce   : > { %904 = vrot.lane.b32.xlu0 %v2123_v3, %s1960_s8  ;;  %1633 = vmatprep.subr.msk.mxu0 %vm2192_vm1, %v764_v47  ;;  %v3063_v53 = vsel %vm2327_vm13, 4294967295, %v3062_v53  ;;  %vm2334_vm5 = vcmp.ge.s32.totalorder %v186_v9, 8  ;;  %vm2346_vm12 = vmand %vm2327_vm13, %vm2243_vm8  ;;  %v3072_v9 = vmov 0  ;;  %v3092_v47 = vmov 0 }
  0xcf   : > { %1680 = vmatprep.subr.msk.mxu1 %vm2305_vm7, %v809_v49  ;;  %870 = vrot.lane.b32.xlu1 %v2123_v3, %s1961_s21  ;;  %v3065_v55 = vsel %vm2334_vm5, 4294967295, %v3064_v55  ;;  %v3067_v56 = vsel %vm2346_vm12, 4294967295, %v3066_v56 }
  0xd0   : > { %1681 = vmatpush1.msk.msra.mxu1 %vm2312_vm10, %v803_v48  ;;  %v755_v51 = vpop.permute.xlu0 %754  ;;  %v720_v52 = vpop.permute.xlu1 %719 }
  0xd1   : > { %v771_v54 = vsel %vm2963_vm6, %v755_v51, %v758_v40  ;;  %1301 = vmatprep.subr.mxu1 %v2123_v3  ;;  %vm2969_vm6 = vmand %vm2334_vm5, %vm2247_vm9 }
  0xd2   : > { %1634 = vmatpush1.msk.msra.mxu0 %vm2205_vm3, %v771_v54  ;;  %1302 = vmatpush1.msra.mxu1 %v2117_v2 }
  0xd4   : > { %v722_v57 = vpop.permute.xlu0 %721  ;;  %v717_v58 = vpop.permute.xlu1 %716 }
  0xd5   : > { %v726_v59 = vsel %vm2966_vm15, %v720_v52, %v722_v57  ;;  %v733_v60 = vsel %vm2966_vm15, %v717_v58, %v720_v52  ;;  %vm3068_vm15 = vcmask 7168  }
  0xd6   : > { %1635 = vmatprep.subr.msk.mxu0 %vm2346_vm12, %v726_v59  ;;  %vm3069_vm2 = vmmov %vm3068_vm15 }
  0xd7   : > { %1636 = vmatpush1.msk.msra.mxu0 %vm2969_vm6, %v733_v60  ;;  %vm2975_vm6 = vcmask 72704   ;;  %vm2379_vm12 = vmand %vm2327_vm13, %vm2192_vm1  ;;  %v3101_v60 = vmov 0 }
  0xd8   : > { %v686_v61 = vpop.permute.xlu0 %685  ;;  %v688_v62 = vpop.permute.xlu1 %687  ;;  %v3071_v6 = vsel %vm2379_vm12, 4294967295, %v3070_v6 }
  0xd9   : > { %v692_v63 = vsel %vm2972_vm4, %v686_v61, %v688_v62 }
  0xda   : > { %1637 = vmatprep.subr.msk.mxu0 %vm2327_vm13, %v692_v63  ;;  %vm3081_vm13 = vmand %vm2334_vm5, %vm2205_vm3 }
  0xdc   : > { %v762_v0 = vpop.permute.xlu0 %761  ;;  %v683_v1 = vpop.permute.xlu1 %682 }
  0xdd   : > { %v765_v2 = vsel %vm3068_vm15, %v760_v44, %v762_v0  ;;  %v766_v3 = vsel %vm3069_vm2, %v762_v0, %v755_v51  ;;  %v699_v4 = vsel %vm2972_vm4, %v683_v1, %v686_v61  ;;  %vm2385_vm2 = vcmp.ge.s32.totalorder %v207_v22, 8 }
  0xde   : > { %1638 = vmatpush1.msk.msra.mxu0 %vm2334_vm5, %v699_v4  ;;  %1682 = vmatprep.subr.msk.mxu1 %vm2257_vm11, %v766_v3  ;;  %v3073_v9 = vsel %vm2385_vm2, 4294967295, %v3072_v9  ;;  %vm2392_vm15 = vcmp.ge.s32.totalorder %v200_v25, 8  ;;  %vm3080_vm4 = vcmask 72704   ;;  %vm2989_vm11 = vcmask 449536  }
  0xdf   : > { %1683 = vmatpush1.msk.msra.mxu1 %vm2269_vm14, %v765_v2  ;;  %v3075_v11 = vsel %vm2392_vm15, 4294967295, %v3074_v11  ;;  %vm2986_vm14 = vcmp.ge.s32.totalorder %v2171_v5, 64 }
  0xe0   : > { %v648_v7 = vpop.permute.xlu0 %647  ;;  %v650_v8 = vpop.permute.xlu1 %649 }
  0xe1   : > { %v654_v10 = vsel %vm2975_vm6, %v648_v7, %v650_v8  ;;  %vm2410_vm6 = vmand %vm2392_vm15, %vm2312_vm10 }
  0xe2   : > { %1639 = vmatprep.subr.msk.mxu0 %vm2379_vm12, %v654_v10  ;;  %v3077_v18 = vsel %vm2410_vm6, 4294967295, %v3076_v18  ;;  %vm3078_vm12 = vcmask 56320   ;;  %vm3082_vm10 = vmand %vm2385_vm2, %vm2305_vm7 }
  0xe3   : > { %vm3079_vm1 = vmmov %vm3078_vm12 }
  0xe4   : > { %v724_v12 = vpop.permute.xlu0 %723  ;;  %v645_v20 = vpop.permute.xlu1 %644 }
  0xe5   : > { %v727_v21 = vsel %vm3078_vm12, %v722_v57, %v724_v12  ;;  %v728_v22 = vsel %vm3079_vm1, %v724_v12, %v717_v58  ;;  %v661_v23 = vsel %vm3080_vm4, %v645_v20, %v648_v7  ;;  %vm2434_vm1 = vmand %vm2188_vm0, %vm2243_vm8  ;;  %vm3085_vm4 = vnez %v3037_v16 }
  0xe6   : > { %1640 = vmatpush1.msk.msra.mxu0 %vm3081_vm13, %v661_v23  ;;  %1684 = vmatprep.subr.msk.mxu1 %vm3082_vm10, %v728_v22  ;;  %v3084_v24 = vsel %vm2434_vm1, 4294967295, %v3083_v24  ;;  %vm2442_vm12 = vmand %vm2986_vm14, %vm3085_vm4  ;;  %vm3088_vm13 = vcmask 64512  }
  0xe7   : > { %1685 = vmatpush1.msk.msra.mxu1 %vm2410_vm6, %v727_v21  ;;  %vm624_vm10 = vmand %vm2442_vm12, %vm2247_vm9  ;;  %vm2990_vm6 = vcmask 457728  }
  0xe8   : > { %v610_v25 = vpop.permute.xlu0 %609  ;;  %v612_v26 = vpop.permute.xlu1 %611  ;;  %vm3089_vm14 = vmmov %vm3088_vm13 }
  0xe9   : > { %v2447_v29 = vsel %vm2989_vm11, %v610_v25, %v612_v26 }
  0xea   : > { %1641 = vmatprep.subr.msk.mxu0 %vm2434_vm1, %v2447_v29 }
  0xec   : > { %v690_v30 = vpop.permute.xlu0 %689  ;;  %v607_v34 = vpop.permute.xlu1 %606 }
  0xed   : > { %v693_v35 = vsel %vm3088_vm13, %v688_v62, %v690_v30  ;;  %v694_v36 = vsel %vm3089_vm14, %v690_v30, %v683_v1  ;;  %v2459_v39 = vsel %vm2989_vm11, %v607_v34, %v610_v25  ;;  %vm3090_vm14 = vnez %v3049_v33 }
  0xee   : > { %1642 = vmatpush1.msk.msra.mxu0 %vm624_vm10, %v2459_v39  ;;  %1686 = vmatprep.subr.msk.mxu1 %vm2385_vm2, %v694_v36  ;;  %vm2997_vm10 = vmand %vm2385_vm2, %vm3090_vm14  ;;  %vm3091_vm13 = vnez %v3053_v38 }
  0xef   : > { %1687 = vmatpush1.msk.msra.mxu1 %vm2392_vm15, %v693_v35  ;;  %vm2480_vm11 = vmand %vm2392_vm15, %vm3091_vm13  ;;  %vm3000_vm15 = vcmask 465920   ;;  %vm3004_vm13 = vcmask 515072  }
  0xf0   : > { %v576_v40 = vpop.permute.xlu0 %575  ;;  %v578_v42 = vpop.permute.xlu1 %577  ;;  %v3093_v47 = vsel %vm2480_vm11, 4294967295, %v3092_v47 }
  0xf1   : > { %v2467_v43 = vsel %vm2990_vm6, %v576_v40, %v578_v42  ;;  %vm3094_vm6 = vcmask 72704  }
  0xf2   : > { %1643 = vmatprep.subr.msk.mxu0 %vm2188_vm0, %v2467_v43  ;;  %vm3095_vm1 = vmmov %vm3094_vm6  ;;  %vm3096_vm0 = vcmask 457728  }
  0xf4   : > { %v652_v44 = vpop.permute.xlu0 %651  ;;  %v573_v45 = vpop.permute.xlu1 %572 }
  0xf5   : > { %v655_v48 = vsel %vm3094_vm6, %v650_v8, %v652_v44  ;;  %v656_v49 = vsel %vm3095_vm1, %v652_v44, %v645_v20  ;;  %v2487_v51 = vsel %vm3096_vm0, %v573_v45, %v576_v40  ;;  %vm3097_vm0 = vnez %v3041_v19  ;;  %vm552_vm6 = vmand %vm2442_vm12, %vm2205_vm3 }
  0xf6   : > { %1644 = vmatpush1.msk.msra.mxu0 %vm2442_vm12, %v2487_v51  ;;  %1688 = vmatprep.subr.msk.mxu1 %vm2997_vm10, %v656_v49  ;;  %vm3098_vm1 = vnez %v3047_v32  ;;  %vm3105_vm12 = vcmask 465920  }
  0xf7   : > { %1689 = vmatpush1.msk.msra.mxu1 %vm2480_vm11, %v655_v48  ;;  %vm3003_vm10 = vmand %vm3098_vm1, %vm2305_vm7  ;;  %vm3099_vm11 = vnez %v3061_v50 }
  0xf8   : > { %v534_v52 = vpop.permute.xlu0 %533  ;;  %v536_v54 = vpop.permute.xlu1 %535 }
  0xf9   : > { %v2500_v57 = vsel %vm3000_vm15, %v534_v52, %v536_v54  ;;  %vm3100_vm15 = vnez %v3051_v37 }
  0xfa   : > { %1645 = vmatprep.subr.msk.mxu0 %vm3097_vm0, %v2500_v57  ;;  %vm2517_vm2 = vmand %vm3100_vm15, %vm3099_vm11  ;;  %vm3103_vm0 = vcmask 449536  }
  0xfb   : > { %v3102_v60 = vsel %vm2517_vm2, 4294967295, %v3101_v60  ;;  %vm3104_vm4 = vmmov %vm3103_vm0 }
  0xfc   : > { %v614_v58 = vpop.permute.xlu0 %613  ;;  %v531_v59 = vpop.permute.xlu1 %530 }
  0xfd   : > { %v2522_v61 = vsel %vm3103_vm0, %v612_v26, %v614_v58  ;;  %v2525_v62 = vsel %vm3104_vm4, %v614_v58, %v607_v34  ;;  %v2528_v63 = vsel %vm3105_vm12, %v531_v59, %v534_v52  ;;  %vm3106_vm4 = vcmp.ge.s32.totalorder %v2171_v5, 64 }
  0xfe   : > { %1646 = vmatpush1.msk.msra.mxu0 %vm552_vm6, %v2528_v63  ;;  %1690 = vmatprep.subr.msk.mxu1 %vm3003_vm10, %v2525_v62  ;;  %vm510_vm0 = vmand %vm3106_vm4, %vm2247_vm9  ;;  %vm3107_vm6 = vcmask 457728   ;;  %vm3005_vm10 = vcmask 523264   ;;  %vm3109_vm4 = vcmask 465920  }
  0xff   : > { %1691 = vmatpush1.msk.msra.mxu1 %vm2517_vm2, %v2522_v61  ;;  %vm3108_vm12 = vmmov %vm3107_vm6 }
 0x100   : > { %v496_v0 = vpop.permute.xlu0 %495  ;;  %v498_v1 = vpop.permute.xlu1 %497 }
 0x101   : > { %v2541_v2 = vsel %vm3004_vm13, %v496_v0, %v498_v1 }
 0x102   : > { %1647 = vmatprep.subr.msk.mxu0 %vm2243_vm8, %v2541_v2 }
 0x104   : > { %v580_v3 = vpop.permute.xlu0 %579  ;;  %v493_v4 = vpop.permute.xlu1 %492 }
 0x105   : > { %v2551_v7 = vsel %vm3107_vm6, %v578_v42, %v580_v3  ;;  %v2554_v8 = vsel %vm3108_vm12, %v580_v3, %v573_v45  ;;  %v2557_v10 = vsel %vm3004_vm13, %v493_v4, %v496_v0  ;;  %vm3111_vm6 = vcmp.ge.s32.totalorder %v2171_v5, 64  ;;  %vm3112_vm12 = vmand %vm3098_vm1, %vm3090_vm14 }
 0x106   : > { %1648 = vmatpush1.msk.msra.mxu0 %vm510_vm0, %v2557_v10  ;;  %1692 = vmatprep.subr.msk.mxu1 %vm3098_vm1, %v2554_v8  ;;  %vm3110_vm0 = vmmov %vm3109_vm4  ;;  %vm3007_vm13 = vcmask 531456  }
 0x107   : > { %1693 = vmatpush1.msk.msra.mxu1 %vm3100_vm15, %v2551_v7  ;;  %vm3009_vm15 = vcmask 580608  }
 0x108   : > { %v462_v12 = vpop.permute.xlu0 %461  ;;  %v464_v20 = vpop.permute.xlu1 %463 }
 0x109   : > { %v2567_v21 = vsel %vm3005_vm10, %v462_v12, %v464_v20 }
 0x10a   : > { %1248 = vmatprep.subr.mxu0 %v2567_v21 }
 0x10c   : > { %v538_v22 = vpop.permute.xlu0 %537  ;;  %v459_v23 = vpop.permute.xlu1 %458 }
 0x10d   : > { %v2571_v25 = vsel %vm3109_vm4, %v536_v54, %v538_v22  ;;  %v2574_v26 = vsel %vm3110_vm0, %v538_v22, %v531_v59  ;;  %v2577_v27 = vsel %vm3005_vm10, %v459_v23, %v462_v12  ;;  %vm3113_vm4 = vnez %v3055_v41  ;;  %vm438_vm10 = vmand %vm3111_vm6, %vm2205_vm3 }
 0x10e   : > { %1649 = vmatpush1.msk.msra.mxu0 %vm3111_vm6, %v2577_v27  ;;  %1694 = vmatprep.subr.msk.mxu1 %vm3112_vm12, %v2574_v26  ;;  %vm3114_vm0 = vnez %v3035_v14  ;;  %vm3115_vm12 = vcmask 515072  }
 0x10f   : > { %1695 = vmatpush1.msk.msra.mxu1 %vm3113_vm4, %v2571_v25  ;;  %vm3116_vm4 = vmmov %vm3115_vm12 }
 0x110   : > { %v424_v30 = vpop.permute.xlu0 %423  ;;  %v426_v34 = vpop.permute.xlu1 %425 }
 0x111   : > { %v2592_v35 = vsel %vm3007_vm13, %v424_v30, %v426_v34 }
 0x112   : > { %1650 = vmatprep.subr.msk.mxu0 %vm3114_vm0, %v2592_v35 }
 0x114   : > { %v500_v36 = vpop.permute.xlu0 %499  ;;  %v421_v40 = vpop.permute.xlu1 %420 }
 0x115   : > { %v2602_v42 = vsel %vm3115_vm12, %v498_v1, %v500_v36  ;;  %v2605_v44 = vsel %vm3116_vm4, %v500_v36, %v493_v4  ;;  %v2608_v45 = vsel %vm3007_vm13, %v421_v40, %v424_v30  ;;  %vm3117_vm4 = vmmov %vm3111_vm6 }
 0x116   : > { %1651 = vmatpush1.msk.msra.mxu0 %vm438_vm10, %v2608_v45  ;;  %1696 = vmatprep.subr.msk.mxu1 %vm2305_vm7, %v2605_v44  ;;  %vm2621_vm6 = vmand %vm3117_vm4, %vm2334_vm5  ;;  %vm3120_vm10 = vnez %v3067_v56  ;;  %vm3122_vm4 = vcmask 523264  }
 0x117   : > { %1697 = vmatpush1.msk.msra.mxu1 %vm3099_vm11, %v2602_v42  ;;  %vm400_vm12 = vmand %vm2621_vm6, %vm2247_vm9  ;;  %vm3010_vm11 = vcmask 588800  }
 0x118   : > { %v386_v48 = vpop.permute.xlu0 %385  ;;  %v388_v49 = vpop.permute.xlu1 %387  ;;  %vm3123_vm13 = vmmov %vm3122_vm4 }
 0x119   : > { %v2626_v54 = vsel %vm3009_vm15, %v386_v48, %v388_v49 }
 0x11a   : > { %1652 = vmatprep.subr.msk.mxu0 %vm3120_vm10, %v2626_v54  ;;  %vm3017_vm10 = vcmp.lt.s32.totalorder %v2197_v15, 448 }
 0x11c   : > { %v466_v58 = vpop.permute.xlu0 %465  ;;  %v383_v59 = vpop.permute.xlu1 %382 }
 0x11d   : > { %v2636_v5 = vsel %vm3009_vm15, %v383_v59, %v386_v48  ;;  %v2639_v0 = vsel %vm3122_vm4, %v466_v58, %v459_v23  ;;  %v469_v1 = vsel %vm3123_vm13, %v464_v20, %v466_v58  ;;  %vm3124_vm15 = vnez %v3063_v53 }
 0x11e   : > { %3121 = vst [vmem:[#allocation12_spill] sm:$0xff] %v2636_v5  ;;  %1653 = vmatpush1.msk.msra.mxu0 %vm400_vm12, %v2636_v5  ;;  %1319 = vmatprep.subr.mxu1 %v2639_v0  ;;  %vm3125_vm4 = vcmask 531456   ;;  %vm3015_vm12 = vcmask 596992  }
 0x11f   : > { %1320 = vmatpush1.msra.mxu1 %v469_v1  ;;  %vm3126_vm13 = vmmov %vm3125_vm4 }
 0x120   : > { %v352_v3 = vpop.permute.xlu0 %351  ;;  %v354_v4 = vpop.permute.xlu1 %353 }
 0x121   : > { %v2645_v12 = vsel %vm3010_vm11, %v352_v3, %v354_v4 }
 0x122   : > { %1654 = vmatprep.subr.msk.mxu0 %vm3124_vm15, %v2645_v12  ;;  %vm3128_vm15 = vnez %v3053_v38 }
 0x124   : > { %v428_v22 = vpop.permute.xlu0 %427  ;;  %v349_v23 = vpop.permute.xlu1 %348 }
 0x125   : > { %v431_v30 = vsel %vm3125_vm4, %v426_v34, %v428_v22  ;;  %v2652_v20 = vsel %vm3126_vm13, %v428_v22, %v421_v40  ;;  %v2655_v36 = vsel %vm3010_vm11, %v349_v23, %v352_v3  ;;  %vm3129_vm4 = vnez %v3071_v6  ;;  %vm328_vm13 = vmand %vm2621_vm6, %vm2205_vm3  ;;  %v3167_v17 = vld [vmem:[#allocation12_spill] sm:$0xff] }
 0x126   : > { %3127 = vst [vmem:[#allocation13_spill] sm:$0xff] %v2655_v36  ;;  %1655 = vmatpush1.msk.msra.mxu0 %vm2621_vm6, %v2655_v36  ;;  %1698 = vmatprep.subr.msk.mxu1 %vm3090_vm14, %v2652_v20  ;;  %vm3130_vm11 = vcmask 580608   ;;  %vm3133_vm6 = vnez %v3073_v9 }
 0x127   : > { %1699 = vmatpush1.msk.msra.mxu1 %vm3128_vm15, %v431_v30  ;;  %vm3131_vm5 = vmmov %vm3130_vm11  ;;  %vm3132_vm15 = vnez %v3037_v16 }
 0x128   : > { %v310_v48 = vpop.permute.xlu0 %309  ;;  %v312_v34 = vpop.permute.xlu1 %311 }
 0x129   : > { %v2666_v40 = vsel %vm3015_vm12, %v310_v48, %v312_v34 }
 0x12a   : > { %1656 = vmatprep.subr.msk.mxu0 %vm3129_vm4, %v2666_v40  ;;  %vm3016_vm4 = vmand %vm3132_vm15, %vm2247_vm9 }
 0x12c   : > { %v390_v58 = vpop.permute.xlu0 %389  ;;  %v304_v3 = vpop.permute.xlu1 %303 }
 0x12d   : > { %v393_v22 = vsel %vm3130_vm11, %v388_v49, %v390_v58  ;;  %v2677_v36 = vsel %vm3131_vm5, %v390_v58, %v383_v59  ;;  %v2680_v5 = vsel %vm3015_vm12, %v304_v3, %v310_v48  ;;  %vm3134_vm11 = vmand %vm3133_vm6, %vm2305_vm7  ;;  %vm3135_vm5 = vnez %v3084_v24 }
 0x12e   : > { %1657 = vmatpush1.msk.msra.mxu0 %vm328_vm13, %v2680_v5  ;;  %1700 = vmatprep.subr.msk.mxu1 %vm3134_vm11, %v2677_v36  ;;  %vm3136_vm12 = vnez %v3077_v18  ;;  %vm2709_vm13 = vmand %vm3017_vm10, %vm3098_vm1  ;;  %vm3139_vm11 = vcmask 588800  }
 0x12f   : > { %1658 = vmatprep.subr.msk.mxu0 %vm3135_vm5, %v2522_v61  ;;  %1701 = vmatpush1.msk.msra.mxu1 %vm3136_vm12, %v393_v22  ;;  %vm3140_vm12 = vmmov %vm3139_vm11  ;;  %vm3141_vm5 = vnez %v3033_v13 }
 0x130   : > { %v356_v49 = vpop.permute.xlu0 %355  ;;  %1659 = vmatpush2.msk.msra.mxu0 %vm3016_vm4, %v2447_v29  ;;  %v314_v52 = vpop.permute.xlu1 %313  ;;  %vm3142_vm4 = vcmask 596992   ;;  %vm1095_vm10 = vmand %vm2709_vm13, %vm2305_vm7 }
 0x131   : > { %v359_v61 = vsel %vm3139_vm11, %v354_v4, %v356_v49  ;;  %v2715_v48 = vsel %vm3140_vm12, %v356_v49, %v349_v23  ;;  %1660 = vmatprep.subr.msk.mxu0 %vm3141_vm5, %v2551_v7  ;;  %v2727_v29 = vsel %vm3142_vm4, %v314_v52, %v304_v3  ;;  %vm3143_vm11 = vnez %v3041_v19  ;;  %vm3145_vm1 = vmmov %vm3142_vm4 }
 0x132   : > { %1661 = vmatpush2.msk.msra.mxu0 %vm3132_vm15, %v2467_v43  ;;  %1702 = vmatprep.subr.msk.mxu1 %vm3133_vm6, %v2715_v48  ;;  %vm3144_vm12 = vnez %v3075_v11  ;;  %v317_v43 = vsel %vm3145_vm1, %v312_v34, %v314_v52  ;;  %vm3146_vm4 = vmand %vm3132_vm15, %vm2205_vm3  ;;  %vm3148_vm1 = vnez %v3093_v47 }
 0x133   : > { %1662 = vmatprep.subr.msk.mxu0 %vm3143_vm11, %v2571_v25  ;;  %1703 = vmatpush1.msk.msra.mxu1 %vm3144_vm12, %v359_v61  ;;  %vm3147_vm11 = vmand %vm3133_vm6, %vm3090_vm14  ;;  %vm3159_vm12 = vnez %v3061_v50 }
 0x134   : > { %v901_v7 = vpop.permute.xlu0 %900  ;;  %1663 = vmatpush2.msk.msra.mxu0 %vm3146_vm4, %v2500_v57  ;;  %1704 = vmatprep.subr.msk.mxu1 %vm3147_vm11, %v2727_v29  ;;  %vm3150_vm4 = vcmp.lt.s32.totalorder %v2197_v15, 448 }
 0x135   : > { %1664 = vmatprep.subr.msk.mxu0 %vm2243_vm8, %v2602_v42  ;;  %1705 = vmatpush1.msk.msra.mxu1 %vm3148_vm1, %v317_v43  ;;  %v903_v19 = vpop.permute.xlu1 %902  ;;  %vm1059_vm8 = vmand %vm2709_vm13, %vm3090_vm14  ;;  %vm872_vm1 = vcmask 982016  }
 0x136   : > { %1665 = vmatpush2.msk.msra.mxu0 %vm2247_vm9, %v2541_v2  ;;  %1706 = vmatprep.subr.msk.mxu1 %vm1095_vm10, %v2459_v39  ;;  %vm3149_vm10 = vnez %v3051_v37  ;;  %vm1035_vm11 = vmand %vm3150_vm4, %vm2305_vm7 }
 0x137   : > { %1276 = vmatprep.subr.mxu0 %v469_v1  ;;  %1707 = vmatpush2.msk.msra.mxu1 %vm2517_vm2, %v2525_v62 }
 0x138   : > { %v899_v28 = vpop.permute.xlu0 %898  ;;  %1277 = vmatpush2.msra.mxu0 %v2567_v21  ;;  %1708 = vmatprep.subr.msk.mxu1 %vm2709_vm13, %v2487_v51  ;;  %vm3151_vm13 = vnez %v3067_v56 }
 0x139   : > { %1666 = vmatprep.subr.msk.mxu0 %vm3114_vm0, %v431_v30  ;;  %1709 = vmatpush2.msk.msra.mxu1 %vm3149_vm10, %v2554_v8  ;;  %v867_v39 = vpop.permute.xlu1 %866  ;;  %vm3152_vm0 = vnez %v3055_v41  ;;  %vm3153_vm10 = vnez %v3065_v55  ;;  %v1112_v55 = vld [vmem:[#allocation6] sm:$0xff] }
 0x13a   : > { %1667 = vmatpush2.msk.msra.mxu0 %vm2205_vm3, %v2592_v35  ;;  %1710 = vmatprep.subr.msk.mxu1 %vm1059_vm8, %v2528_v63  ;;  %vm3154_vm4 = vmand %vm3153_vm10, %vm2247_vm9  ;;  %vm3155_vm8 = vcmp.lt.s32.totalorder %v2197_v15, 448 }
 0x13b   : > { %1668 = vmatprep.subr.msk.mxu0 %vm3151_vm13, %v393_v22  ;;  %1711 = vmatpush2.msk.msra.mxu1 %vm3152_vm0, %v2574_v26  ;;  %vm2800_vm2 = vmand %vm3155_vm8, %vm3133_vm6  ;;  %vm906_vm13 = vcmask 973824   ;;  %vm3158_vm0 = vnez %v3063_v53 }
 0x13c   : > { %1669 = vmatpush2.msk.msra.mxu0 %vm3154_vm4, %v2626_v54  ;;  %1712 = vmatprep.subr.msk.mxu1 %vm1035_vm11, %v2557_v10  ;;  %vm3160_vm11 = vmmov %vm3155_vm8  ;;  %v869_v41 = vpop.permute.xlu0 %868  ;;  %v908_v50 = vsel %vm906_vm13, %v901_v7, %v903_v19  ;;  %v907_v15 = vsel %vm906_vm13, %v899_v28, %v901_v7 }
 0x13d   : > { %1670 = vmatprep.subr.msk.mxu0 %vm3158_vm0, %v359_v61  ;;  %1713 = vmatpush2.msk.msra.mxu1 %vm3159_vm12, %v2605_v44  ;;  %vm999_vm4 = vmand %vm3160_vm11, %vm3090_vm14  ;;  %v874_v53 = vsel %vm872_vm1, %v867_v39, %v869_v41  ;;  %v865_v56 = vpop.permute.xlu1 %864  ;;  %vm3164_vm11 = vnez %v3084_v24 }
 0x13e   : > { %1671 = vmatpush2.msk.msra.mxu0 %vm3153_vm10, %v2645_v12  ;;  %vm3161_vm6 = vmmov %vm3155_vm8  ;;  %vm3162_vm8 = vnez %v3071_v6  ;;  %v873_v6 = vsel %vm872_vm1, %v865_v56, %v867_v39 }
 0x13f   : > { %1714 = vmatprep.subr.msk.mxu1 %vm3161_vm6, %v2577_v27  ;;  %1672 = vmatprep.subr.msk.mxu0 %vm3162_vm8, %v317_v43  ;;  %vm979_vm12 = vmand %vm2800_vm2, %vm2305_vm7  ;;  %vm3165_vm6 = vnez %v3053_v38  ;;  %v3169_v38 = vld [vmem:[#allocation13_spill] sm:$0xff] }
 0x140   : > { %1348 = vmatpush2.msra.mxu1 %v2639_v0  ;;  %vm3163_vm0 = vmand %vm3153_vm10, %vm2205_vm3  ;;  %vm3168_vm3 = vnez %v3077_v18  ;;  %v905_v31 = vpop.permute.xlu0 %904 }
 0x141   : > { %1673 = vmatpush2.msk.msra.mxu0 %vm3163_vm0, %v2666_v40  ;;  %1715 = vmatprep.subr.msk.mxu1 %vm999_vm4, %v2608_v45  ;;  %vm3166_vm8 = vmand %vm3132_vm15, %vm2247_vm9  ;;  %vm3170_vm9 = vnez %v3075_v11  ;;  %v915_v13 = vsel %vm906_vm13, %v905_v31, %v899_v28  ;;  %v871_v33 = vpop.permute.xlu1 %870  ;;  %v909_v16 = vsel %vm906_vm13, %v903_v19, %v905_v31  ;;  %vm3175_vm4 = vnez %v3051_v37 }
 0x142   : > { %1674 = vmatprep.subr.msk.mxu0 %vm3164_vm11, %v908_v50  ;;  %1716 = vmatpush2.msk.msra.mxu1 %vm3165_vm6, %v2652_v20  ;;  %vm943_vm10 = vmand %vm2800_vm2, %vm3090_vm14  ;;  %vm3171_vm14 = vnez %v3093_v47  ;;  %v881_v9 = vsel %vm872_vm1, %v871_v33, %v865_v56  ;;  %v875_v11 = vsel %vm872_vm1, %v869_v41, %v871_v33 }
 0x143   : > { %1675 = vmatpush2.msk.msra.mxu0 %vm3166_vm8, %v907_v15  ;;  %1717 = vmatprep.subr.msk.mxu1 %vm979_vm12, %v3167_v17 }
 0x144   : > { %1676 = vmatprep.subr.msk.mxu0 %vm3141_vm5, %v874_v53  ;;  %1718 = vmatpush2.msk.msra.mxu1 %vm3168_vm3, %v2677_v36  ;;  %vm3174_vm5 = vnez %v3102_v60 }
 0x145   : > { %1677 = vmatpush2.msk.msra.mxu0 %vm3132_vm15, %v873_v6  ;;  %1719 = vmatprep.subr.msk.mxu1 %vm2800_vm2, %v3169_v38  ;;  %vm3172_vm15 = vnez %v3047_v32 }
 0x146   : > { %1720 = vmatpush2.msk.msra.mxu1 %vm3170_vm9, %v2715_v48  ;;  %1291 = vmatmul.mubr.f32.vlgmr.msra.gmra.mxu0 %v1112_v55  ;;  %vm3173_vm2 = vmand %vm3172_vm15, %vm2305_vm7 }
 0x147   : > { %1721 = vmatprep.subr.msk.mxu1 %vm943_vm10, %v2680_v5 }
 0x148   : > { %1722 = vmatpush2.msk.msra.mxu1 %vm3171_vm14, %v2727_v29 }
 0x149   : > { %1723 = vmatprep.subr.msk.mxu1 %vm3173_vm2, %v915_v13 }
 0x14a   : > { %1724 = vmatpush2.msk.msra.mxu1 %vm3174_vm5, %v909_v16 }
 0x14b   : > { %1725 = vmatprep.subr.msk.mxu1 %vm3172_vm15, %v881_v9 }
 0x14c   : > { %1726 = vmatpush2.msk.msra.mxu1 %vm3175_vm4, %v875_v11 }
 0x14d   : > { %1362 = vmatmul.mubr.f32.vlgmr.msra.gmra.mxu1 %v1112_v55 }
 0x206   : > { %v1292_v18 = vpop.f32.mrf.mxu0 }
 0x208   : > { %v1294_v24 = vpop.f32.mrf.mxu0 }
 0x209   : > { %v1368_v47 = vadd.f32 %v1294_v24, %v1292_v18 }
 0x20d   : > { %v1363_v46 = vpop.f32.mrf.mxu1 }
 0x20e   : > { %v1369_v51 = vadd.f32 %v1368_v47, %v1363_v46 }
 0x20f   : > { %v1365_v57 = vpop.f32.mrf.mxu1 }
 0x210   : > { %v1370_v62 = vadd.f32 %v1369_v51, %v1365_v57 }
 0x212   : > { %1371 = vadd.xlane.f32.xlu0 %v1370_v62 }
 0x29b   : > { %v1372_v63 = vpop.xlane.xlu0 %1371 }
 0x29c   : > { %v1373_v60 = vmul.f32 0.001953125, %v1372_v63 }
 0x29e   : > { %v1374_v2 = vsub.f32 %v1292_v18, %v1373_v60  ;;  %v1375_v8 = vsub.f32 %v1294_v24, %v1373_v60  ;;  %v1376_v10 = vsub.f32 %v1363_v46, %v1373_v60  ;;  %v1377_v21 = vsub.f32 %v1365_v57, %v1373_v60 }
 0x2a0   : > { %v1378_v32 = vmul.f32 %v1374_v2, %v1374_v2  ;;  %v1379_v25 = vmul.f32 %v1375_v8, %v1375_v8  ;;  %v1380_v26 = vmul.f32 %v1376_v10, %v1376_v10  ;;  %v1381_v27 = vmul.f32 %v1377_v21, %v1377_v21 }
 0x2a2   : > { %v1382_v37 = vadd.f32 %v1379_v25, %v1378_v32 }
 0x2a4   : > { %v1383_v35 = vadd.f32 %v1382_v37, %v1380_v26 }
 0x2a6   : > { %v1384_v42 = vadd.f32 %v1383_v35, %v1381_v27 }
 0x2a8   : > { %1385 = vadd.xlane.f32.xlu1 %v1384_v42 }
 0x331   : > { %v1386_v44 = vpop.xlane.xlu1 %1385 }
 0x332   : > { %v1387_v45 = vmul.f32 0.001953125, %v1386_v44 }
 0x334   : > { %v1388_v54 = vadd.f32 1e-05, %v1387_v45 }
 0x336   : > { %1801 = vrsqrt.f32 %v1388_v54 }
 0x343   : > { %v1802_v5 = vpop.eup %1801 }
 0x344   : > { %v2884_v0 = vmul.f32 %v1802_v5, %v1374_v2  ;;  %v2886_v1 = vmul.f32 %v1802_v5, %v1375_v8  ;;  %v2888_v4 = vmul.f32 %v1802_v5, %v1376_v10  ;;  %v2890_v12 = vmul.f32 %v1802_v5, %v1377_v21 }
 0x346   : > { %v1394_v23 = vand.u32 2147483647, %v2884_v0  ;;  %v1395_v30 = vand.u32 2147483647, %v2886_v1  ;;  %v1396_v20 = vand.u32 2147483647, %v2888_v4 }
 0x347   : > { %v1397_v36 = vand.u32 2147483647, %v2890_v12  ;;  %vm1478_vm7 = vcmp.ge.f32.partialorder %v2884_v0, 0.0  ;;  %vm1479_vm1 = vcmp.ge.f32.partialorder %v2886_v1, 0.0  ;;  %vm1480_vm13 = vcmp.ge.f32.partialorder %v2888_v4, 0.0 }
 0x348   : > { %v1398_v34 = vmul.f32 0.70710677, %v1394_v23  ;;  %v1399_v40 = vmul.f32 0.70710677, %v1395_v30  ;;  %v1400_v58 = vmul.f32 0.70710677, %v1396_v20 }
 0x349   : > { %v1401_v3 = vmul.f32 0.70710677, %v1397_v36  ;;  %vm1481_vm12 = vcmp.ge.f32.partialorder %v2890_v12, 0.0 }
 0x34a   : > { %v1402_v22 = vmul.f32 0.3275911, %v1398_v34  ;;  %v1403_v49 = vmul.f32 0.3275911, %v1399_v40  ;;  %v1404_v52 = vmul.f32 0.3275911, %v1400_v58 }
 0x34b   : > { %v1405_v59 = vmul.f32 0.3275911, %v1401_v3  ;;  %v1454_v7 = vsub.f32 0.0, %v1398_v34  ;;  %v1455_v19 = vsub.f32 0.0, %v1399_v40  ;;  %v1456_v28 = vsub.f32 0.0, %v1400_v58 }
 0x34c   : > { %v1406_v61 = vadd.f32 1.0, %v1402_v22  ;;  %v1407_v48 = vadd.f32 1.0, %v1403_v49  ;;  %v1408_v29 = vadd.f32 1.0, %v1404_v52  ;;  %v1457_v39 = vsub.f32 0.0, %v1401_v3 }
 0x34d   : > { %v1409_v43 = vadd.f32 1.0, %v1405_v59  ;;  %v1458_v14 = vmul.f32 %v1454_v7, %v1398_v34  ;;  %v1459_v41 = vmul.f32 %v1455_v19, %v1399_v40  ;;  %v1460_v50 = vmul.f32 %v1456_v28, %v1400_v58 }
 0x34e   : > { %1803 = vrcp.f32 %v1406_v61  ;;  %v1461_v15 = vmul.f32 %v1457_v39, %v1401_v3 }
 0x34f   : > { %1805 = vrcp.f32 %v1407_v48  ;;  %v1462_v55 = vmul.f32 1.442695, %v1458_v14  ;;  %v1464_v38 = vmul.f32 1.442695, %v1459_v41  ;;  %v1466_v9 = vmul.f32 1.442695, %v1460_v50 }
 0x350   : > { %1807 = vrcp.f32 %v1408_v29  ;;  %v1468_v24 = vmul.f32 1.442695, %v1461_v15 }
 0x351   : > { %1809 = vrcp.f32 %v1409_v43 }
 0x352   : > { %1811 = vpow2.f32 %v1462_v55 }
 0x353   : > { %1813 = vpow2.f32 %v1464_v38 }
 0x354   : > { %1815 = vpow2.f32 %v1466_v9 }
 0x355   : > { %1817 = vpow2.f32 %v1468_v24 }
 0x35b   : > { %v1804_v53 = vpop.eup %1803 }
 0x35c   : > { %v1806_v56 = vpop.eup %1805  ;;  %v1418_v17 = vmul.f32 1.0614054, %v1804_v53 }
 0x35d   : > { %v1808_v6 = vpop.eup %1807  ;;  %v1419_v31 = vmul.f32 1.0614054, %v1806_v56 }
 0x35e   : > { %v1810_v13 = vpop.eup %1809  ;;  %v1420_v33 = vmul.f32 1.0614054, %v1808_v6  ;;  %v1614_v16 = vadd.f32 -1.4531521, %v1418_v17  ;;  %v1490_v17 = vmul.f32 0.5, %v2884_v0  ;;  %v1493_v0 = vmul.f32 0.5, %v2890_v12 }
 0x35f   : > { %v1421_v11 = vmul.f32 1.0614054, %v1810_v13  ;;  %v1615_v18 = vadd.f32 -1.4531521, %v1419_v31  ;;  %v1812_v34 = vpop.eup %1811  ;;  %v1491_v31 = vmul.f32 0.5, %v2886_v1 }
 0x360   : > { %v1616_v47 = vadd.f32 -1.4531521, %v1420_v33  ;;  %v1426_v46 = vmul.f32 %v1804_v53, %v1614_v16  ;;  %v1814_v3 = vpop.eup %1813  ;;  %v1492_v33 = vmul.f32 0.5, %v2888_v4 }
 0x361   : > { %v1617_v51 = vadd.f32 -1.4531521, %v1421_v11  ;;  %v1427_v57 = vmul.f32 %v1806_v56, %v1615_v18  ;;  %v1816_v52 = vpop.eup %1815 }
 0x362   : > { %v1428_v62 = vmul.f32 %v1808_v6, %v1616_v47  ;;  %v1430_v63 = vadd.f32 1.4214138, %v1426_v46  ;;  %v1818_v48 = vpop.eup %1817 }
 0x363   : > { %v1429_v60 = vmul.f32 %v1810_v13, %v1617_v51  ;;  %v1431_v2 = vadd.f32 1.4214138, %v1427_v57 }
 0x364   : > { %v1432_v8 = vadd.f32 1.4214138, %v1428_v62  ;;  %v1434_v10 = vmul.f32 %v1804_v53, %v1430_v63 }
 0x365   : > { %v1433_v21 = vadd.f32 1.4214138, %v1429_v60  ;;  %v1435_v32 = vmul.f32 %v1806_v56, %v1431_v2 }
 0x366   : > { %v1436_v25 = vmul.f32 %v1808_v6, %v1432_v8  ;;  %v1618_v26 = vadd.f32 -0.28449672, %v1434_v10 }
 0x367   : > { %v1437_v37 = vmul.f32 %v1810_v13, %v1433_v21  ;;  %v1619_v27 = vadd.f32 -0.28449672, %v1435_v32 }
 0x368   : > { %v1620_v35 = vadd.f32 -0.28449672, %v1436_v25  ;;  %v1442_v42 = vmul.f32 %v1804_v53, %v1618_v26 }
 0x369   : > { %v1621_v44 = vadd.f32 -0.28449672, %v1437_v37  ;;  %v1443_v45 = vmul.f32 %v1806_v56, %v1619_v27 }
 0x36a   : > { %v1444_v54 = vmul.f32 %v1808_v6, %v1620_v35  ;;  %v1446_v5 = vadd.f32 0.2548296, %v1442_v42 }
 0x36b   : > { %v1445_v23 = vmul.f32 %v1810_v13, %v1621_v44  ;;  %v1447_v30 = vadd.f32 0.2548296, %v1443_v45 }
 0x36c   : > { %v1448_v20 = vadd.f32 0.2548296, %v1444_v54  ;;  %v1450_v36 = vmul.f32 %v1804_v53, %v1446_v5 }
 0x36d   : > { %v1449_v40 = vadd.f32 0.2548296, %v1445_v23  ;;  %v1451_v58 = vmul.f32 %v1806_v56, %v1447_v30 }
 0x36e   : > { %v1452_v22 = vmul.f32 %v1808_v6, %v1448_v20  ;;  %v1470_v49 = vmul.f32 %v1812_v34, %v1450_v36 }
 0x36f   : > { %v1453_v59 = vmul.f32 %v1810_v13, %v1449_v40  ;;  %v1471_v61 = vmul.f32 %v1814_v3, %v1451_v58 }
 0x370   : > { %v1472_v29 = vmul.f32 %v1816_v52, %v1452_v22  ;;  %v1474_v43 = vsub.f32 1.0, %v1470_v49 }
 0x371   : > { %v1473_v7 = vmul.f32 %v1818_v48, %v1453_v59  ;;  %v1475_v19 = vsub.f32 1.0, %v1471_v61 }
 0x372   : > { %v1476_v28 = vsub.f32 1.0, %v1472_v29  ;;  %v1482_v39 = vsub.f32 0.0, %v1474_v43 }
 0x373   : > { %v1477_v14 = vsub.f32 1.0, %v1473_v7  ;;  %v1483_v41 = vsub.f32 0.0, %v1475_v19 }
 0x374   : > { %v1484_v50 = vsub.f32 0.0, %v1476_v28  ;;  %v1486_v53 = vsel %vm1478_vm7, %v1474_v43, %v1482_v39 }
 0x375   : > { %v1485_v15 = vsub.f32 0.0, %v1477_v14  ;;  %v1487_v56 = vsel %vm1479_vm1, %v1475_v19, %v1483_v41  ;;  %v1494_v55 = vadd.f32 1.0, %v1486_v53 }
 0x376   : > { %v1488_v6 = vsel %vm1480_vm13, %v1476_v28, %v1484_v50  ;;  %v1495_v38 = vadd.f32 1.0, %v1487_v56 }
 0x377   : > { %v1489_v13 = vsel %vm1481_vm12, %v1477_v14, %v1485_v15  ;;  %v1496_v16 = vadd.f32 1.0, %v1488_v6  ;;  %v1498_v9 = vmul.f32 %v1494_v55, %v1490_v17 }
 0x378   : > { %v1497_v11 = vadd.f32 1.0, %v1489_v13  ;;  %v1499_v18 = vmul.f32 %v1495_v38, %v1491_v31 }
 0x379   : > { %v1500_v24 = vmul.f32 %v1496_v16, %v1492_v33  ;;  %1502 = vst [vmem:[%s172_s15] sm:$0xff] %v1498_v9 }
 0x37a   : > { %v1501_v47 = vmul.f32 %v1497_v11, %v1493_v0  ;;  %1503 = vst [vmem:[%s172_s15 + $0x8] sm:$0xff] %v1499_v18 }
 0x37b   : > { %1504 = vst [vmem:[%s172_s15 + $0x10] sm:$0xff] %v1500_v24 }
 0x37c   : > { %1505 = vst [vmem:[%s172_s15 + $0x18] sm:$0xff] %v1501_v47 }
 0x37d   : > { %1886 = shalt.err (!%p1883_p3)
}
 0x37e   : > { %s1887_s25 = scalar_lea.hbm %s2910_s19, 512  ;;  %s1891_s27 = scalar_lea.hbm %s2949_s2, 1024 }
 0x37f   : > { %p1888_p12 = scmp.ne.s32.totalorder %s2910_s19, %s1887_s25  ;;  %p1892_p4 = scmp.lt.s32.totalorder %s2910_s19, %s2949_s2 }
 0x380   : > { %p1893_p6 = scmp.lt.s32.totalorder %s1891_s27, %s1887_s25 }
 0x381   : > { %p1889_p5 = pnand %p1888_p12, %p3176_p11 }
 0x382   : > { %p1894_p8 = por %p1893_p6, %p1892_p4 }
 0x383   : > { %p1890_p7 = pneg %p1889_p5 }
 0x385   : > { %p1895_p9 = pnand %p1894_p8, %p1890_p7 }
 0x387   : > { %1898 = shalt.err (!%p1895_p9)
}
 0x388   : > { %1733 = dma.vmem_to_hbm [thread:$0]  (%p3176_p11), %s1522_s7, 512, %s2910_s19, %s1507_s13  }
 0x389 PF: > { %s1533_s4 = sand.u32 1, %s1929_s9   ;;  %p3177_p13 = scmp.ne.s32.totalorder %s3021_s16, 0 }
 0x38a   : > { %p3178_p10 = scmp.ge.s32.totalorder %s1941_s12, 2  ;;  %s1534_s8 = scalar_lea.sflag [#allocation5], %s1533_s4 }
 0x38c   : > { %p1744_p1 = pnand %p3178_p10, %p3177_p13 }
 0x38e   : > { %p1745_p2 = pneg %p1744_p1 }
 0x390   : > { %1924 = dma.done.wait (%p1745_p2), %s1534_s8, 512  }
 0x391   : > { %1926 = vsyncadd (%p1745_p2), %s1534_s8, 4294966784  ;;  %p16_p0 = scmp.ge.s32.totalorder %s2026_s20, 4   ;;  %s3179_s9 = smov %s1933_s10 }
 0x392   : > { %s3180_s10 = smov %s1937_s11  ;;  %s3181_s11 = smov %s2053_s28 }
 0x393   : > { %s3182_s12 = smov %s2026_s20  ;;  %18 = sbr.rel (!%p16_p0) target bundleno = 6 (0x6), region = 77 }
 0x398   :  { %1539 = vsyncpa [#allocation4], 1 }
 0x399   :  { %1541 = vsyncpa [#allocation4 + $0x1], 1 }
 0x39a   :  { %1542 = vsyncpa [#allocation7], 1 }
 0x39b   :  { %1543 = vsyncpa [#allocation5], 1 }
 0x39c   :  { %1545 = vsyncpa [#allocation5 + $0x1], 1 }

</bundles_post_ra>
